<compile_context>
chip_gen: v5e
topology: v5e:2x2
jax: 0.10.0
libtpu: 0.0.40
codegen_flags: <defaults>
</compile_context>

<pallas_src>
import functools

import jax
import jax.numpy as jnp
from jax.experimental import pallas as pl
from jax.experimental.pallas import tpu as pltpu

LAMBDA = 3.0


# ----------------------------------------------------------------------------
# Per-generation VMEM budget (tile sizing) and explicit vmem_limit_bytes.
# ----------------------------------------------------------------------------
def _vmem_config():
    kind = ""
    try:
        kind = jax.devices()[0].device_kind.lower()
    except Exception:
        pass
    if "v5" in kind:        # v5e/v5p: 128 MiB physical, 16 MiB scoped default -> raise it
        return 48 << 20, 96 << 20
    if "v6" in kind:        # v6e: 128 MiB physical -> big blocks, close to HBM roofline
        return 64 << 20, 96 << 20
    # v7x (64 MiB physical) or unknown generation: stay conservative so
    # double-buffering of the dominant src stream stays alive.
    return 32 << 20, 48 << 20


def _choose_td(B, D, C, HW, budget_bytes):
    """Depth planes per grid step.

    The kernel block trailing dims are (C, TD*HW): C is the full channel extent
    (exempt from the sublane rule) and TD*HW must be a multiple of 128 lanes
    unless it spans the full D*HW axis.  Sized so double-buffered src (bf16) and
    out (f32) blocks plus the vol slab, the (16,N)/(8,N) MLP intermediates, the
    weight / weight-sum buffers and the padded parameter tiles fit the budget.
    """
    per_elem = C * (2 * 2 + 2 * 4 + 4) + (16 + 8 + 2 + 1) * 4
    fixed = 256 << 10                                   # params, semaphores, slack
    divisors = sorted({t for t in range(1, D + 1) if D % t == 0}, reverse=True)
    cands = [t for t in divisors if (t * HW) % 128 == 0 or t == D] or [D]
    td = next((t for t in cands if fixed + t * HW * per_elem <= budget_bytes), cands[-1])
    # v7x has 2 TensorCores fed by the "parallel" grid axes: make sure there are
    # at least 2 parallel blocks of work when possible.
    if B * (D // td) < 2:
        smaller = [t for t in cands if t < td and B * (D // t) >= 2]
        if smaller:
            td = smaller[0]
    return td


# ----------------------------------------------------------------------------
# Pallas kernel.  grid = (B, D // TD, S); S (source views) is the reduction axis.
# src block (C, TD*HW) bf16, output block (C, TD*HW) f32 resident across s
# (accumulator).  All loads/stores are full-tile; the only cross-lane work is
# one sublane reduction per grid step (last MLP layer).
#
# NOTE: the wsum VMEM scratch is only correct because `s` is the LAST grid axis
# (innermost, "arbitrary"): it is zeroed at s==0 and consumed at s==S-1 within
# the same (b, d) block before the next block starts.  Do not reorder the grid.
# ----------------------------------------------------------------------------
def _cost_agg_kernel(src_ref, w1_ref, b1_ref, w2_ref, b2_ref, w3t_ref, b3_ref,
                     out_ref, wsum_ref, *, lam):
    s = pl.program_id(2)

    @pl.when(s == 0)
    def _():
        out_ref[...] = jnp.zeros_like(out_ref)
        wsum_ref[...] = jnp.zeros_like(wsum_ref)

    # ratio = src_volume / (ref_volume + 1e-8), precomputed in the wrapper and
    # streamed from HBM as bf16; all arithmetic here is f32.
    ratio = src_ref[...].astype(jnp.float32)                    # (C, N)
    vol = jnp.exp(-lam * jnp.abs(1.0 - ratio))                  # (C, N)  Laplace volume

    # weight_probs: three 1x1x1 convs (BN folded, eval mode) + sigmoid.
    # Layers 1 & 2 as single big-N MXU dots; layer 3 (1x8) on VPU + XLU reduce.
    h1 = jnp.maximum(
        jnp.dot(w1_ref[...], vol, preferred_element_type=jnp.float32) + b1_ref[...], 0.0)
    h2 = jnp.maximum(
        jnp.dot(w2_ref[...], h1, preferred_element_type=jnp.float32) + b2_ref[...], 0.0)
    wlin = jnp.sum(h2 * w3t_ref[...], axis=0, keepdims=True) + b3_ref[...]   # (1, N)
    weight = jax.nn.sigmoid(wlin)                                # (1, N)

    # One full-tile accumulate each; weight broadcasts over the C sublanes.
    out_ref[...] += vol * weight
    wsum_ref[...] += weight

    @pl.when(s == pl.num_programs(2) - 1)
    def _():
        inv_w = pl.reciprocal(wsum_ref[...], approx=True)        # (1, N)
        out_ref[...] = out_ref[...] * inv_w


# ----------------------------------------------------------------------------
# Plain-JAX glue: MVSNet-style homography warping.
# TODO(synk): the bilinear grid_sample gather is a data-dependent gather with no
# clean Pallas TPU equivalent, so it stays in plain JAX.
# ----------------------------------------------------------------------------
def _bilinear_sample_zeros(fea, px, py):
    """fea [B,C,H,W]; px,py [B,D,HW] pixel coords -> [B,C,D,HW].
    Equivalent to grid_sample(mode='bilinear', padding_mode='zeros',
    align_corners=True) on the projected coordinates."""
    B, C, H, W = fea.shape
    x0 = jnp.floor(px)
    y0 = jnp.floor(py)
    x1 = x0 + 1.0
    y1 = y0 + 1.0
    wx1 = px - x0
    wx0 = 1.0 - wx1
    wy1 = py - y0
    wy0 = 1.0 - wy1
    fea_flat = fea.reshape(B, C, H * W)

    def corner(xi, yi):
        valid = ((xi >= 0) & (xi <= W - 1) & (yi >= 0) & (yi <= H - 1)).astype(fea.dtype)
        xc = jnp.clip(xi, 0, W - 1).astype(jnp.int32)
        yc = jnp.clip(yi, 0, H - 1).astype(jnp.int32)
        idx = yc * W + xc                                        # [B,D,HW]
        g = jax.vmap(lambda fb, ib: fb[:, ib])(fea_flat, idx)    # [B,C,D,HW]
        return g * valid[:, None]

    out = ((wx0 * wy0)[:, None] * corner(x0, y0)
           + (wx1 * wy0)[:, None] * corner(x1, y0)
           + (wx0 * wy1)[:, None] * corner(x0, y1)
           + (wx1 * wy1)[:, None] * corner(x1, y1))
    return out


def homo_warping_jax(src_fea, src_proj, ref_proj, depth_values):
    """src_fea [B,C,H,W], projs [B,4,4], depth_values [B,D] -> [B,C,D,H,W]."""
    B, C, H, W = src_fea.shape
    D = depth_values.shape[1]
    proj = src_proj @ jnp.linalg.inv(ref_proj)                   # [B,4,4]
    rot = proj[:, :3, :3]
    trans = proj[:, :3, 3:4]                                     # [B,3,1]

    y, x = jnp.meshgrid(jnp.arange(H, dtype=jnp.float32),
                        jnp.arange(W, dtype=jnp.float32), indexing="ij")
    xyz = jnp.stack([x.ravel(), y.ravel(), jnp.ones(H * W, jnp.float32)], axis=0)  # [3,HW]
    rot_xyz = jnp.einsum("bij,jp->bip", rot, xyz)                                  # [B,3,HW]
    rot_depth_xyz = rot_xyz[:, :, None, :] * depth_values[:, None, :, None]        # [B,3,D,HW]
    proj_xyz = rot_depth_xyz + trans[:, :, :, None]                                # [B,3,D,HW]
    px = proj_xyz[:, 0] / proj_xyz[:, 2]
    py = proj_xyz[:, 1] / proj_xyz[:, 2]

    warped = _bilinear_sample_zeros(src_fea, px, py)             # [B,C,D,HW]
    return warped.reshape(B, C, D, H, W)


# ----------------------------------------------------------------------------
# Parameters: deterministic synthetic init; Conv3d(1x1x1, bias=False)+BN folded
# into (W_folded, b_folded) using eval-mode running statistics.
# ----------------------------------------------------------------------------
def init_params(key, in_chs=8):
    keys = jax.random.split(key, 6)

    def conv_w(k, out_c, in_c):
        return 0.1 * jax.random.normal(k, (out_c, in_c), jnp.float32)

    def bn(k, c):
        k1, k2, k3, k4 = jax.random.split(k, 4)
        gamma = 1.0 + 0.1 * jax.random.normal(k1, (c,), jnp.float32)
        beta = 0.05 * jax.random.normal(k2, (c,), jnp.float32)
        mean = 0.1 * jax.random.normal(k3, (c,), jnp.float32)
        var = 1.0 + 0.1 * jax.random.uniform(k4, (c,), jnp.float32)
        return gamma, beta, mean, var

    eps = 1e-5
    w1 = conv_w(keys[0], 16, in_chs)
    w2 = conv_w(keys[1], 8, 16)
    w3 = conv_w(keys[2], 1, 8)
    b3 = 0.1 * jax.random.normal(keys[3], (1, 1), jnp.float32)

    g1, be1, m1, v1 = bn(keys[4], 16)
    g2, be2, m2, v2 = bn(keys[5], 8)
    s1 = g1 / jnp.sqrt(v1 + eps)
    s2 = g2 / jnp.sqrt(v2 + eps)
    w1f = s1[:, None] * w1
    b1f = (be1 - s1 * m1)[:, None]           # (16, 1)
    w2f = s2[:, None] * w2
    b2f = (be2 - s2 * m2)[:, None]           # (8, 1)
    return w1f, b1f, w2f, b2f, w3, b3


# ----------------------------------------------------------------------------
# Wrapper: warp sources (JAX glue), launch the Pallas kernel, reshape to NCDHW.
# ----------------------------------------------------------------------------
def cost_agg_laplace(features, depth_hypos, ref_proj, src_projs, params, lam=LAMBDA):
    ref_feature = features[0]
    src_features = features[1:]
    B, C, H, W = ref_feature.shape
    D = depth_hypos.shape[1]
    S = len(src_features)
    HW = H * W
    DHW = D * HW

    # ratio = warped_src / (ref + 1e-8): the divide fuses into the (elementwise)
    # warp epilogue so the kernel streams one bf16 tensor and needs no per-depth
    # broadcast of the reference frame.  Cast per view (before stacking), keep the
    # gather-natural [S, B, C, D*HW] layout (depth flattened into the lane axis).
    inv_ref = 1.0 / (ref_feature.reshape(B, C, 1, HW).astype(jnp.float32) + 1e-8)
    ratios = []
    for sf, sp in zip(src_features, src_projs):
        warped = homo_warping_jax(sf, sp, ref_proj, depth_hypos).reshape(B, C, D, HW)
        ratios.append((warped * inv_ref).reshape(B, C, DHW).astype(jnp.bfloat16))
    src_ratios = jnp.stack(ratios, axis=0)                       # [S, B, C, D*HW] bf16

    w1f, b1f, w2f, b2f, w3, b3 = params
    w3t = jnp.transpose(w3)                                      # (8, 1) for the VPU layer

    budget_bytes, vmem_limit = _vmem_config()
    TD = _choose_td(B, D, C, HW, budget_bytes)
    TDN = TD * HW

    cost_est = pl.CostEstimate(
        flops=int((2 * (16 * C + 8 * 16 + 8) + 8 * C) * B * D * HW * S),
        transcendentals=int((C + 2) * B * D * HW * S),
        bytes_accessed=int(2 * S * B * C * DHW + 4 * B * C * DHW),
    )

    out = pl.pallas_call(
        functools.partial(_cost_agg_kernel, lam=lam),
        out_shape=jax.ShapeDtypeStruct((B, C, DHW), jnp.float32),
        grid_spec=pltpu.PrefetchScalarGridSpec(
            num_scalar_prefetch=0,
            grid=(B, D // TD, S),                    # S (views) = reduction axis, last
            in_specs=[
                # [S, B, C, D*HW] -> kernel block (C, TD*HW), lane-dense
                pl.BlockSpec((None, None, C, TDN), lambda b, d, s: (s, b, 0, d)),
                pl.BlockSpec((16, C), lambda b, d, s: (0, 0)),
                pl.BlockSpec((16, 1), lambda b, d, s: (0, 0)),
                pl.BlockSpec((8, 16), lambda b, d, s: (0, 0)),
                pl.BlockSpec((8, 1), lambda b, d, s: (0, 0)),
                pl.BlockSpec((8, 1), lambda b, d, s: (0, 0)),
                pl.BlockSpec((1, 1), lambda b, d, s: (0, 0)),
            ],
            # Output block index constant across s -> stays resident in VMEM and
            # doubles as the cost accumulator.
            out_specs=pl.BlockSpec((None, C, TDN), lambda b, d, s: (b, 0, d)),
            scratch_shapes=[pltpu.VMEM((1, TDN), jnp.float32)],  # weight-sum accumulator
        ),
        compiler_params=pltpu.CompilerParams(
            dimension_semantics=("parallel", "parallel", "arbitrary"),
            vmem_limit_bytes=vmem_limit),
        cost_estimate=cost_est,
    )(src_ratios, w1f, b1f, w2f, b2f, w3t, b3)

    # [B, C, D*HW] -> [B, C, D, H, W]: pure reshape, no transpose pass.
    return out.reshape(B, C, D, H, W)


# ----------------------------------------------------------------------------
# Pure-JAX reference for correctness checking (full f32, exact divides).
# ----------------------------------------------------------------------------
def _weight_mlp_ref(x, params):          # x [B,C,D,H,W] -> [B,1,D,H,W]
    w1f, b1f, w2f, b2f, w3, b3 = params
    h = jnp.einsum("oc,bcdhw->bodhw", w1f, x) + b1f[:, 0][None, :, None, None, None]
    h = jax.nn.relu(h)
    h = jnp.einsum("oc,bcdhw->bodhw", w2f, h) + b2f[:, 0][None, :, None, None, None]
    h = jax.nn.relu(h)
    h = jnp.einsum("oc,bcdhw->bodhw", w3, h) + b3[:, 0][None, :, None, None, None]
    return jax.nn.sigmoid(h)


def reference_cost_agg(features, depth_hypos, ref_proj, src_projs, params, lam=LAMBDA):
    ref_volume = features[0][:, :, None]          # [B,C,1,H,W]
    cost, wsum = 0.0, 0.0
    for sf, sp in zip(features[1:], src_projs):
        src_volume = homo_warping_jax(sf, sp, ref_proj, depth_hypos)
        volume = jnp.exp(-lam * jnp.abs(1 - src_volume / (ref_volume + 1e-08)))
        weight = _weight_mlp_ref(volume, params)
        cost = cost + volume * weight
        wsum = wsum + weight
    return cost / wsum


if __name__ == "__main__":
    key = jax.random.PRNGKey(0)
    B, C, H, W, D, V = 2, 8, 16, 16, 8, 3          # V views = 1 ref + 2 src
    kf, kp = jax.random.split(key, 2)
    feat_keys = jax.random.split(kf, V)
    features = [0.5 + jax.random.uniform(k, (B, C, H, W), jnp.float32) for k in feat_keys]

    # Projection matrices: P = [[K R, K t], [0 0 0 1]]
    fl = 20.0
    K = jnp.array([[fl, 0.0, W / 2.0], [0.0, fl, H / 2.0], [0.0, 0.0, 1.0]], jnp.float32)

    def make_proj(tx, ty):
        R = jnp.eye(3, dtype=jnp.float32)
        t = jnp.array([[tx], [ty], [0.0]], jnp.float32)
        top = jnp.concatenate([K @ R, K @ t], axis=1)
        bot = jnp.array([[0.0, 0.0, 0.0, 1.0]], jnp.float32)
        return jnp.tile(jnp.concatenate([top, bot], axis=0)[None], (B, 1, 1))

    ref_proj = make_proj(0.0, 0.0)
    src_projs = [make_proj(0.4, 0.0), make_proj(0.0, -0.3)]
    depth_hypos = jnp.tile(jnp.linspace(5.0, 10.0, D, dtype=jnp.float32)[None], (B, 1))

    params = init_params(kp, in_chs=C)

    out = cost_agg_laplace(features, depth_hypos, ref_proj, src_projs, params, LAMBDA)
    out = jax.block_until_ready(out)

    ref_out = reference_cost_agg(features, depth_hypos, ref_proj, src_projs, params, LAMBDA)
    assert out.shape == (B, C, D, H, W), out.shape
    # Tolerance accounts for bf16 HBM storage of the ratio volume and the
    # approximate reciprocal in the finalize (both intentional perf choices).
    max_err = float(jnp.max(jnp.abs(out - ref_out)))
    assert max_err < 5e-2, f"max abs err {max_err}"
    print("KERNEL_OK")
</pallas_src>

<mosaic_0001>
module attributes {stable_mosaic.version = 11 : i64} {
  func.func @_cost_agg_kernel(%arg0: i32, %arg1: i32, %arg2: i32, %arg3: memref<1x1x8x2048xbf16, #tpu.memory_space<vmem>>, %arg4: memref<16x8xf32, #tpu.memory_space<vmem>>, %arg5: memref<16x1xf32, #tpu.memory_space<vmem>>, %arg6: memref<8x16xf32, #tpu.memory_space<vmem>>, %arg7: memref<8x1xf32, #tpu.memory_space<vmem>>, %arg8: memref<8x1xf32, #tpu.memory_space<vmem>>, %arg9: memref<1x1xf32, #tpu.memory_space<vmem>>, %arg10: memref<1x8x2048xf32, #tpu.memory_space<vmem>>, %arg11: memref<1x2048xf32, #tpu.memory_space<vmem>>) attributes {dimension_semantics = [#tpu.dimension_semantics<parallel>, #tpu.dimension_semantics<parallel>, #tpu.dimension_semantics<arbitrary>], iteration_bounds = array<i64: 2, 1, 2>, scalar_prefetch = 0 : i64, scratch_operands = 1 : i64, tpu.core_type = #tpu.core_type<tc>, window_params = [{transform_indices = @transform_0, window_bounds = array<i64: 1, 1, 8, 2048>}, {pipeline_mode = #tpu.pipeline_mode<synchronous>, transform_indices = @transform_1, window_bounds = array<i64: 16, 8>}, {pipeline_mode = #tpu.pipeline_mode<synchronous>, transform_indices = @transform_2, window_bounds = array<i64: 16, 1>}, {pipeline_mode = #tpu.pipeline_mode<synchronous>, transform_indices = @transform_3, window_bounds = array<i64: 8, 16>}, {pipeline_mode = #tpu.pipeline_mode<synchronous>, transform_indices = @transform_4, window_bounds = array<i64: 8, 1>}, {pipeline_mode = #tpu.pipeline_mode<synchronous>, transform_indices = @transform_5, window_bounds = array<i64: 8, 1>}, {pipeline_mode = #tpu.pipeline_mode<synchronous>, transform_indices = @transform_6, window_bounds = array<i64: 1, 1>}, {transform_indices = @transform_7, window_bounds = array<i64: 1, 8, 2048>}]} {
    %c0_i32 = arith.constant 0 : i32
    %0 = arith.cmpi eq, %arg2, %c0_i32 : i32
    %1 = arith.extui %0 : i1 to i32
    %c0_i32_0 = arith.constant 0 : i32
    %2 = arith.cmpi ne, %1, %c0_i32_0 : i32
    scf.if %2 {
      %cst_34 = arith.constant 0.000000e+00 : f32
      %53 = vector.broadcast %cst_34 : f32 to vector<8x2048xf32>
      %c0_35 = arith.constant 0 : index
      %c0_36 = arith.constant 0 : index
      %c0_37 = arith.constant 0 : index
      %54 = vector.load %arg10[%c0_35, %c0_36, %c0_37] : memref<1x8x2048xf32, #tpu.memory_space<vmem>>, vector<1x8x2048xf32>
      %55 = vector.shape_cast %54 : vector<1x8x2048xf32> to vector<8x2048xf32>
      %56 = vector.shape_cast %53 : vector<8x2048xf32> to vector<1x8x2048xf32>
      tpu.vector_store %arg10[%c0_35, %c0_36, %c0_37], %56 {strides = array<i32>} : memref<1x8x2048xf32, #tpu.memory_space<vmem>>, vector<1x8x2048xf32>,
      %cst_38 = arith.constant 0.000000e+00 : f32
      %57 = vector.broadcast %cst_38 : f32 to vector<1x2048xf32>
      %c0_39 = arith.constant 0 : index
      %c0_40 = arith.constant 0 : index
      %58 = vector.load %arg11[%c0_39, %c0_40] : memref<1x2048xf32, #tpu.memory_space<vmem>>, vector<1x2048xf32>
      tpu.vector_store %arg11[%c0_39, %c0_40], %57 {strides = array<i32>} : memref<1x2048xf32, #tpu.memory_space<vmem>>, vector<1x2048xf32>,
    } else {
    }
    %c0 = arith.constant 0 : index
    %c0_1 = arith.constant 0 : index
    %c0_2 = arith.constant 0 : index
    %c0_3 = arith.constant 0 : index
    %3 = vector.load %arg3[%c0, %c0_1, %c0_2, %c0_3] : memref<1x1x8x2048xbf16, #tpu.memory_space<vmem>>, vector<1x1x8x2048xbf16>
    %4 = vector.shape_cast %3 : vector<1x1x8x2048xbf16> to vector<8x2048xbf16>
    %5 = arith.extf %4 : vector<8x2048xbf16> to vector<8x2048xf32>
    %cst = arith.constant 1.000000e+00 : f32
    %6 = vector.broadcast %cst : f32 to vector<8x2048xf32>
    %7 = arith.subf %6, %5 : vector<8x2048xf32>
    %8 = math.absf %7 : vector<8x2048xf32>
    %cst_4 = arith.constant -3.000000e+00 : f32
    %9 = vector.broadcast %cst_4 : f32 to vector<8x2048xf32>
    %10 = arith.mulf %9, %8 : vector<8x2048xf32>
    %11 = math.exp %10 : vector<8x2048xf32>
    %c0_5 = arith.constant 0 : index
    %c0_6 = arith.constant 0 : index
    %12 = vector.load %arg4[%c0_5, %c0_6] : memref<16x8xf32, #tpu.memory_space<vmem>>, vector<16x8xf32>
    %cst_7 = arith.constant dense<0.000000e+00> : vector<16x2048xf32>
    %13 = tpu.matmul %12, %11, %cst_7 {dimension_numbers = #tpu.dot_dimension_numbers<[1], [0], [0], [1], [0, 0, 1, 1], [], []>} : vector<16x8xf32>, vector<8x2048xf32>, vector<16x2048xf32> -> vector<16x2048xf32>
    %c0_8 = arith.constant 0 : index
    %c0_9 = arith.constant 0 : index
    %14 = vector.load %arg5[%c0_8, %c0_9] : memref<16x1xf32, #tpu.memory_space<vmem>>, vector<16x1xf32>
    %15 = vector.broadcast %14 : vector<16x1xf32> to vector<16x2048xf32>
    %16 = arith.addf %13, %15 : vector<16x2048xf32>
    %cst_10 = arith.constant 0.000000e+00 : f32
    %17 = vector.broadcast %cst_10 : f32 to vector<16x2048xf32>
    %18 = arith.maximumf %16, %17 : vector<16x2048xf32>
    %c0_11 = arith.constant 0 : index
    %c0_12 = arith.constant 0 : index
    %19 = vector.load %arg6[%c0_11, %c0_12] : memref<8x16xf32, #tpu.memory_space<vmem>>, vector<8x16xf32>
    %cst_13 = arith.constant dense<0.000000e+00> : vector<8x2048xf32>
    %20 = tpu.matmul %19, %18, %cst_13 {dimension_numbers = #tpu.dot_dimension_numbers<[1], [0], [0], [1], [0, 0, 1, 1], [], []>} : vector<8x16xf32>, vector<16x2048xf32>, vector<8x2048xf32> -> vector<8x2048xf32>
    %c0_14 = arith.constant 0 : index
    %c0_15 = arith.constant 0 : index
    %21 = vector.load %arg7[%c0_14, %c0_15] : memref<8x1xf32, #tpu.memory_space<vmem>>, vector<8x1xf32>
    %22 = vector.broadcast %21 : vector<8x1xf32> to vector<8x2048xf32>
    %23 = arith.addf %20, %22 : vector<8x2048xf32>
    %cst_16 = arith.constant 0.000000e+00 : f32
    %24 = vector.broadcast %cst_16 : f32 to vector<8x2048xf32>
    %25 = arith.maximumf %23, %24 : vector<8x2048xf32>
    %c0_17 = arith.constant 0 : index
    %c0_18 = arith.constant 0 : index
    %26 = vector.load %arg8[%c0_17, %c0_18] : memref<8x1xf32, #tpu.memory_space<vmem>>, vector<8x1xf32>
    %27 = vector.broadcast %26 : vector<8x1xf32> to vector<8x2048xf32>
    %28 = arith.mulf %25, %27 : vector<8x2048xf32>
    %cst_19 = arith.constant dense<0.000000e+00> : vector<2048xf32>
    %29 = vector.multi_reduction <add>, %28, %cst_19 [0] : vector<8x2048xf32> to vector<2048xf32>
    %30 = vector.shape_cast %29 : vector<2048xf32> to vector<1x2048xf32>
    %c0_20 = arith.constant 0 : index
    %c0_21 = arith.constant 0 : index
    %31 = vector.load %arg9[%c0_20, %c0_21] : memref<1x1xf32, #tpu.memory_space<vmem>>, vector<1x1xf32>
    %32 = vector.broadcast %31 : vector<1x1xf32> to vector<1x2048xf32>
    %33 = arith.addf %30, %32 : vector<1x2048xf32>
    %34 = arith.negf %33 : vector<1x2048xf32>
    %35 = math.exp %34 : vector<1x2048xf32>
    %cst_22 = arith.constant 1.000000e+00 : f32
    %36 = vector.broadcast %cst_22 : f32 to vector<1x2048xf32>
    %37 = arith.addf %36, %35 : vector<1x2048xf32>
    %38 = arith.divf %36, %37 : vector<1x2048xf32>
    %c0_23 = arith.constant 0 : index
    %c0_24 = arith.constant 0 : index
    %c0_25 = arith.constant 0 : index
    %39 = vector.load %arg10[%c0_23, %c0_24, %c0_25] : memref<1x8x2048xf32, #tpu.memory_space<vmem>>, vector<1x8x2048xf32>
    %40 = vector.shape_cast %39 : vector<1x8x2048xf32> to vector<8x2048xf32>
    %41 = vector.broadcast %38 : vector<1x2048xf32> to vector<8x2048xf32>
    %42 = arith.mulf %11, %41 : vector<8x2048xf32>
    %43 = arith.addf %40, %42 : vector<8x2048xf32>
    %c0_26 = arith.constant 0 : index
    %c0_27 = arith.constant 0 : index
    %c0_28 = arith.constant 0 : index
    %44 = vector.load %arg10[%c0_26, %c0_27, %c0_28] : memref<1x8x2048xf32, #tpu.memory_space<vmem>>, vector<1x8x2048xf32>
    %45 = vector.shape_cast %44 : vector<1x8x2048xf32> to vector<8x2048xf32>
    %46 = vector.shape_cast %43 : vector<8x2048xf32> to vector<1x8x2048xf32>
    tpu.vector_store %arg10[%c0_26, %c0_27, %c0_28], %46 {strides = array<i32>} : memref<1x8x2048xf32, #tpu.memory_space<vmem>>, vector<1x8x2048xf32>,
    %c0_29 = arith.constant 0 : index
    %c0_30 = arith.constant 0 : index
    %47 = vector.load %arg11[%c0_29, %c0_30] : memref<1x2048xf32, #tpu.memory_space<vmem>>, vector<1x2048xf32>
    %48 = arith.addf %47, %38 : vector<1x2048xf32>
    %c0_31 = arith.constant 0 : index
    %c0_32 = arith.constant 0 : index
    %49 = vector.load %arg11[%c0_31, %c0_32] : memref<1x2048xf32, #tpu.memory_space<vmem>>, vector<1x2048xf32>
    tpu.vector_store %arg11[%c0_31, %c0_32], %48 {strides = array<i32>} : memref<1x2048xf32, #tpu.memory_space<vmem>>, vector<1x2048xf32>,
    %c1_i32 = arith.constant 1 : i32
    %50 = arith.cmpi eq, %arg2, %c1_i32 : i32
    %51 = arith.extui %50 : i1 to i32
    %c0_i32_33 = arith.constant 0 : i32
    %52 = arith.cmpi ne, %51, %c0_i32_33 : i32
    scf.if %52 {
      %c0_34 = arith.constant 0 : index
      %c0_35 = arith.constant 0 : index
      %53 = vector.load %arg11[%c0_34, %c0_35] : memref<1x2048xf32, #tpu.memory_space<vmem>>, vector<1x2048xf32>
      %54 = tpu.reciprocal %53 {approx = true} : vector<1x2048xf32> -> vector<1x2048xf32>
      %c0_36 = arith.constant 0 : index
      %c0_37 = arith.constant 0 : index
      %c0_38 = arith.constant 0 : index
      %55 = vector.load %arg10[%c0_36, %c0_37, %c0_38] : memref<1x8x2048xf32, #tpu.memory_space<vmem>>, vector<1x8x2048xf32>
      %56 = vector.shape_cast %55 : vector<1x8x2048xf32> to vector<8x2048xf32>
      %57 = vector.broadcast %54 : vector<1x2048xf32> to vector<8x2048xf32>
      %58 = arith.mulf %56, %57 : vector<8x2048xf32>
      %c0_39 = arith.constant 0 : index
      %c0_40 = arith.constant 0 : index
      %c0_41 = arith.constant 0 : index
      %59 = vector.load %arg10[%c0_39, %c0_40, %c0_41] : memref<1x8x2048xf32, #tpu.memory_space<vmem>>, vector<1x8x2048xf32>
      %60 = vector.shape_cast %59 : vector<1x8x2048xf32> to vector<8x2048xf32>
      %61 = vector.shape_cast %58 : vector<8x2048xf32> to vector<1x8x2048xf32>
      tpu.vector_store %arg10[%c0_39, %c0_40, %c0_41], %61 {strides = array<i32>} : memref<1x8x2048xf32, #tpu.memory_space<vmem>>, vector<1x8x2048xf32>,
    } else {
    }
    return
  }
  func.func @transform_0(%arg0: i32, %arg1: i32, %arg2: i32) -> (i32, i32, i32, i32) {
    %c0_i32 = arith.constant 0 : i32
    %c0_i32_0 = arith.constant 0 : i32
    return %arg2, %arg0, %c0_i32, %arg1 : i32, i32, i32, i32
  }
  func.func @transform_1(%arg0: i32, %arg1: i32, %arg2: i32) -> (i32, i32) {
    %c0_i32 = arith.constant 0 : i32
    %c0_i32_0 = arith.constant 0 : i32
    %c0_i32_1 = arith.constant 0 : i32
    return %c0_i32, %c0_i32_0 : i32, i32
  }
  func.func @transform_2(%arg0: i32, %arg1: i32, %arg2: i32) -> (i32, i32) {
    %c0_i32 = arith.constant 0 : i32
    %c0_i32_0 = arith.constant 0 : i32
    %c0_i32_1 = arith.constant 0 : i32
    return %c0_i32, %c0_i32_0 : i32, i32
  }
  func.func @transform_3(%arg0: i32, %arg1: i32, %arg2: i32) -> (i32, i32) {
    %c0_i32 = arith.constant 0 : i32
    %c0_i32_0 = arith.constant 0 : i32
    %c0_i32_1 = arith.constant 0 : i32
    return %c0_i32, %c0_i32_0 : i32, i32
  }
  func.func @transform_4(%arg0: i32, %arg1: i32, %arg2: i32) -> (i32, i32) {
    %c0_i32 = arith.constant 0 : i32
    %c0_i32_0 = arith.constant 0 : i32
    %c0_i32_1 = arith.constant 0 : i32
    return %c0_i32, %c0_i32_0 : i32, i32
  }
  func.func @transform_5(%arg0: i32, %arg1: i32, %arg2: i32) -> (i32, i32) {
    %c0_i32 = arith.constant 0 : i32
    %c0_i32_0 = arith.constant 0 : i32
    %c0_i32_1 = arith.constant 0 : i32
    return %c0_i32, %c0_i32_0 : i32, i32
  }
  func.func @transform_6(%arg0: i32, %arg1: i32, %arg2: i32) -> (i32, i32) {
    %c0_i32 = arith.constant 0 : i32
    %c0_i32_0 = arith.constant 0 : i32
    %c0_i32_1 = arith.constant 0 : i32
    return %c0_i32, %c0_i32_0 : i32, i32
  }
  func.func @transform_7(%arg0: i32, %arg1: i32, %arg2: i32) -> (i32, i32, i32) {
    %c0_i32 = arith.constant 0 : i32
    %c0_i32_0 = arith.constant 0 : i32
    return %arg0, %c0_i32, %arg1 : i32, i32, i32
  }
}

</mosaic_0001>

<bundles_post_ra>
// kernel: tpu_custom_call.1
= control target key start
LH: loop header
LB: loop body
LE: loop exit
PB: predicated region body
PF: predicated region fallthrough
CT: control target
= control target key end

     0   :  { %s3321_s0 = inlined_call_operand.hbm [shape: bf16[2,2,8,2048], index: 0, kind: input, shape index: {}]   ;;  %s3322_s1 = inlined_call_operand.vmem [shape: f32[16,8], index: 1, kind: input, shape index: {}]   ;;  %s3323_s2 = inlined_call_operand.vmem [shape: f32[16,1], index: 2, kind: input, shape index: {}]   ;;  %s3324_s3 = inlined_call_operand.vmem [shape: f32[8,16], index: 3, kind: input, shape index: {}]   ;;  %s3325_s4 = inlined_call_operand.vmem [shape: f32[8,1], index: 4, kind: input, shape index: {}]   ;;  %s3326_s5 = inlined_call_operand.vmem [shape: f32[8,1], index: 5, kind: input, shape index: {}]   ;;  %s3327_s6 = inlined_call_operand.<no memory space> [shape: f32[1,1], index: 6, kind: input, shape index: {}]   ;;  %s3328_s7 = inlined_call_operand.hbm [shape: f32[2,8,2048], index: 7, kind: output, shape index: {}]  }
   0x1   :  { %3335 = sst [smem:[#allocation16_spill]] %s3328_s7  ;;  %v12_v0 = vstv %s3327_s6 }
   0x2   :  { %13 = vst [vmem:[#allocation3] sm:$0x1] %v12_v0 }
   0x3   :  { %14 = vsyncpa [#allocation5], 0 }
   0x4   :  { %16 = vsyncpa [#allocation5 + $0x1], 0 }
   0x5   :  { %17 = vsyncpa [#allocation6], 0 }
   0x6   :  { %19 = vsyncpa [#allocation6 + $0x1], 0  ;;  %s2482_s26 = smov 0   ;;  %s2484_s27 = smov 0  }
   0x7   :  { %s2486_s28 = smov 0   ;;  %s2488_s29 = smov 0  }
   0x8   :  { %s2490_s30 = smov 0   ;;  %s2492_s8 = smov 0  }
   0x9   :  { %s2494_s9 = smov 0   ;;  %s2496_s6 = smov 0  }
   0xa   :  { %s2498_s10 = smov 0   ;;  %s2500_s11 = smov 0  }
   0xb   :  { %s2502_s12 = smov 0  }
   0xc LB: > { %3336 = sst [smem:[#allocation10_spill]] %s2403_s28  ;;  %s1993_s13 = sadd.s32 4294967295, %s2435_s12   ;;  %s2435_s12 = sphi %s2502_s12, %s25_s12   ;;  %s2431_s11 = sphi %s2500_s11, %s3391_s11   ;;  %s2427_s10 = sphi %s2498_s10, %s3390_s10   ;;  %s2423_s6 = sphi %s2496_s6, %s3389_s6   ;;  %s2419_s9 = sphi %s2494_s9, %s3388_s9   ;;  %s2415_s8 = sphi %s2492_s8, %s3387_s8   ;;  %s2411_s30 = sphi %s2490_s30, %s3386_s30   ;;  %s2407_s29 = sphi %s2488_s29, %s3385_s29   ;;  %s2403_s28 = sphi %s2486_s28, %s3379_s28   ;;  %s2399_s27 = sphi %s2484_s27, %s3384_s27   ;;  %s2395_s26 = sphi %s2482_s26, %s3383_s26  }
   0xd   : > { %s1994_s14 = sadd.s32 4294967294, %s2435_s12   ;;  %s37_s15 = sadd.s32 1, %s2427_s10 }
   0xe   : > { %s44_s16 = sadd.s32 1, %s2431_s11  ;;  %p38_p0 = scmp.ge.s32.totalorder %s37_s15, 2 }
   0xf   : > { %s55_s17 = sadd.s32 1, %s2415_s8  ;;  %p62_p1 = scmp.ne.s32.totalorder %s2415_s8, %s2411_s30 }
  0x10   : > { %p63_p2 = scmp.eq.s32.totalorder %s2435_s12, 0  ;;  %s3393_s15 = smov (%p38_p0, %s37_s15), 0 }
  0x11   : > { %3337 = sst [smem:[#allocation11_spill]] %s3393_s15  ;;  %s3395_s16 = smov (!%p38_p0, %s44_s16), %s2431_s11 }
  0x12   : > { %s48_s18 = ssub.s32 %s2427_s10, %s3393_s15  ;;  %p2548_p3 = por %p63_p2, %p62_p1 }
  0x13   : > { %p46_p4 = scmp.ge.s32.totalorder %s3395_s16, 2  ;;  %p68_p5 = scmp.ne.s32.totalorder %s2411_s30, %s2407_s29 }
  0x14   : > { %p69_p6 = scmp.eq.s32.totalorder %s1993_s13, 0  ;;  %s209_s20 = sadd.s32 1, %s2403_s28 }
  0x15   : > { %s3397_s16 = smov (%p46_p4, %s3395_s16), 0  ;;  %p219_p8 = scmp.ne.s32.totalorder %s2403_s28, %s2399_s27 }
  0x16   : > { %3339 = sst [smem:[#allocation12_spill]] %s3397_s16  ;;  %p2556_p7 = por %p69_p6, %p68_p5 }
  0x17   : > { %s49_s22 = ssub.s32 %s2431_s11, %s3397_s16  ;;  %p220_p9 = scmp.eq.s32.totalorder %s1993_s13, 3 }
  0x18   : > { %s50_s23 = sor.u32 %s49_s22, %s48_s18  ;;  %p207_p10 = scmp.eq.s32.totalorder %s49_s22, 0 }
  0x19   : > { %p53_p11 = scmp.eq.s32.totalorder %s50_s23, 0  ;;  %p2564_p12 = por %p220_p9, %p219_p8 }
  0x1a   : > { %s2569_s25 = scalar_select %p207_p10, %s2403_s28, %s209_s20  }
  0x1b   : > { %s3341_s24 = scalar_select %p2564_p12, 1, 0 }
  0x1c   : > { %3343 = sst [smem:[#allocation14_spill]] %s2569_s25  ;;  %p225_p13 = scmp.ne.s32.totalorder %s2399_s27, %s2395_s26 }
  0x1d   : > { %3342 = sst [smem:[#allocation13_spill]] %s3341_s24  ;;  %p226_p0 = scmp.eq.s32.totalorder %s1994_s14, 3 }
  0x1e   : > { %s2572_s29 = scalar_select %p53_p11, %s2415_s8, %s55_s17  }
  0x1f   : > { %p2088_p1 = scmp.lt.s32.totalorder %s2435_s12, 4  ;;  %p2577_p2 = por %p226_p0, %p225_p13 }
  0x20   : > { %3344 = sst [smem:[#allocation15_spill]] %s2572_s29  ;;  %s264_s13 = sand.u32 1, %s2415_s8  }
  0x21   : > { %s1997_s18 = sshll.u32 %s264_s13, 6  ;;  %s1998_s22 = sshll.u32 %s2431_s11, 4 }
  0x22   : > { %s1999_s23 = sshll.u32 %s2427_s10, 5  ;;  %s268_s15 = scalar_lea.vmem [#allocation4], %s1997_s18 }
  0x23   : > { %s281_s7 = sshll.u32 %s268_s15, 4  ;;  %s275_s24 = sadd.s32 %s1999_s23, %s1998_s22  ;;  %s282_s7 = int_to_ptr.vmem [resolvable:$true] %s281_s7 }
  0x24   : > { %s2000_s20 = sshll.u32 %s275_s24, 2  ;;  %p2081_p4 = pnand %p2088_p1, %p2548_p3 }
  0x25   : > { %s277_s14 = scalar_lea.hbm %s3321_s0, %s2000_s20  ;;  %p2001_p5 = scmp.ge.s32.totalorder %s2435_s12, 1 }
  0x26   : > { %s279_s25 = sshll.u32 %s277_s14, 4  ;;  %p286_p6 = scmp.lt.s32.totalorder %s2435_s12, 5  ;;  %s280_s25 = int_to_ptr.hbm [resolvable:$true] %s279_s25 }
  0x27   : > { %s265_s28 = scalar_lea.sflag [#allocation5], %s264_s13 }
  0x28   : > { %2083 = dma.hbm_to_vmem [thread:$0]  (!%p2081_p4), %s280_s25, 1024, %s282_s7, %s265_s28  }
  0x29   : > { %p287_p8 = pnand %p2001_p5, %p286_p6 }
  0x2a   : > { %s292_s15 = sand.u32 (!%p287_p8), 1, %s2411_s30  }
  0x2b   : > { %290 = sbr.rel (%p287_p8) target bundleno = 562 (0x232), region = 48  ;;  %s2002_s18 = sshll.u32 (!%p287_p8), %s292_s15, 6 }
  0x2c   : > { %s293_s22 = scalar_lea.sflag (!%p287_p8), [#allocation5], %s292_s15  ;;  %s2592_s24 = scalar_lea.vmem (!%p287_p8), [#allocation4], %s2002_s18 }
  0x30   : > { %2386 = dma.done.wait (%p2556_p7), %s293_s22, 1024  }
  0x31   : > { %2388 = vsyncadd (%p2556_p7), %s293_s22, 4294966272  ;;  %s325_s19 = sand.u32 1, %s2399_s27   ;;  %p2004_p3 = scmp.ne.s32.totalorder %s2419_s9, 0 }
  0x32   : > { %s2003_s29 = sshll.u32 %s325_s19, 7 }
  0x33   : > { %s2601_s7 = scalar_lea.vmem [#allocation7], %s2003_s29  ;;  %333 = sbr.rel (%p2004_p3) target bundleno = 75 (0x4b), region = 56 }
  0x38   : > { %v2437_v1 = vmov 0.0  }
  0x39   : > { %334 = vst [vmem:[%s2601_s7] sm:$0xff] %v2437_v1 }
  0x3a   : > { %335 = vst [vmem:[%s2601_s7 + $0x8] sm:$0xff] %v2437_v1 }
  0x3b   : > { %336 = vst [vmem:[%s2601_s7 + $0x10] sm:$0xff] %v2437_v1 }
  0x3c   : > { %337 = vst [vmem:[%s2601_s7 + $0x18] sm:$0xff] %v2437_v1 }
  0x3d   : > { %338 = vst [vmem:[%s2601_s7 + $0x20] sm:$0xff] %v2437_v1 }
  0x3e   : > { %339 = vst [vmem:[%s2601_s7 + $0x28] sm:$0xff] %v2437_v1 }
  0x3f   : > { %340 = vst [vmem:[%s2601_s7 + $0x30] sm:$0xff] %v2437_v1 }
  0x40   : > { %341 = vst [vmem:[%s2601_s7 + $0x38] sm:$0xff] %v2437_v1 }
  0x41   : > { %342 = vst [vmem:[%s2601_s7 + $0x40] sm:$0xff] %v2437_v1 }
  0x42   : > { %343 = vst [vmem:[%s2601_s7 + $0x48] sm:$0xff] %v2437_v1 }
  0x43   : > { %344 = vst [vmem:[%s2601_s7 + $0x50] sm:$0xff] %v2437_v1 }
  0x44   : > { %345 = vst [vmem:[%s2601_s7 + $0x58] sm:$0xff] %v2437_v1 }
  0x45   : > { %346 = vst [vmem:[%s2601_s7 + $0x60] sm:$0xff] %v2437_v1 }
  0x46   : > { %347 = vst [vmem:[%s2601_s7 + $0x68] sm:$0xff] %v2437_v1 }
  0x47   : > { %348 = vst [vmem:[%s2601_s7 + $0x70] sm:$0xff] %v2437_v1 }
  0x48   : > { %349 = vst [vmem:[%s2601_s7 + $0x78] sm:$0xff] %v2437_v1 }
  0x49   : > { %350 = vst [vmem:[#allocation2] sm:$0xff] %v2437_v1 }
  0x4a   : > { %351 = vst [vmem:[#allocation2 + $0x8] sm:$0xff] %v2437_v1 }
  0x4b PF: > { %v352_v2 = vld [vmem:[%s2592_s24] sm:$0xff]  ;;  %v353_v3 = vld [vmem:[%s2592_s24 + $0x8] sm:$0xff]  ;;  %v355_v8 = vld [vmem:[%s2592_s24 + $0x18] sm:$0xff]  ;;  %v2438_v9 = vmov 0   ;;  %vm470_vm0 = vcmask 64512   ;;  %vm884_vm1 = vcmask 130048  }
  0x4c   : > { %v360_v4 = vunpack.c.l.bf16 %v352_v2  ;;  %v361_v5 = vunpack.c.h.bf16 %v352_v2  ;;  %v362_v6 = vunpack.c.l.bf16 %v353_v3  ;;  %v363_v7 = vunpack.c.h.bf16 %v353_v3  ;;  %2180 = vset.pattern.permute.xlu0 %v2438_v9  ;;  %v459_v10 = vld [vmem:[%s3323_s2 + $0x8] sm:$0xff]  ;;  %2181 = vset.pattern.permute.xlu1 %v2438_v9  ;;  %v357_v18 = vld [vmem:[%s2592_s24 + $0x28] sm:$0xff]  ;;  %v356_v23 = vld [vmem:[%s2592_s24 + $0x20] sm:$0xff]  ;;  %p2069_p7 = scmp.ne.s32.totalorder %s2419_s9, 1 }
  0x4d   : > { %v366_v11 = vunpack.c.l.bf16 %v355_v8  ;;  %v367_v12 = vunpack.c.h.bf16 %v355_v8  ;;  %467 = vperm.xlu0 %2180, %v459_v10   ;;  %v354_v13 = vld [vmem:[%s2592_s24 + $0x10] sm:$0xff]  ;;  %2182 = vset.pattern.permute.xlu2 %v2438_v9  ;;  %v370_v27 = vunpack.c.l.bf16 %v357_v18  ;;  %v371_v31 = vunpack.c.h.bf16 %v357_v18 }
  0x4e   : > { %v376_v14 = vsub.f32 1.0, %v360_v4  ;;  %v377_v15 = vsub.f32 1.0, %v361_v5  ;;  %v378_v16 = vsub.f32 1.0, %v362_v6  ;;  %v379_v17 = vsub.f32 1.0, %v363_v7  ;;  %v458_v36 = vld [vmem:[%s3323_s2] sm:$0xff] }
  0x4f   : > { %v382_v19 = vsub.f32 1.0, %v366_v11  ;;  %v383_v20 = vsub.f32 1.0, %v367_v12  ;;  %v364_v21 = vunpack.c.l.bf16 %v354_v13  ;;  %v365_v22 = vunpack.c.h.bf16 %v354_v13  ;;  %v2635_v0 = vld [vmem:[%s3322_s1] sm:$0xff]  ;;  %v359_v11 = vld [vmem:[%s2592_s24 + $0x38] sm:$0xff] }
  0x50   : > { %v392_v24 = vand.u32 2147483647, %v376_v14  ;;  %v393_v25 = vand.u32 2147483647, %v377_v15  ;;  %v394_v26 = vand.u32 2147483647, %v378_v16  ;;  %v368_v44 = vunpack.c.l.bf16 %v356_v23 }
  0x51   : > { %v395_v28 = vand.u32 2147483647, %v379_v17  ;;  %v398_v29 = vand.u32 2147483647, %v382_v19  ;;  %v399_v30 = vand.u32 2147483647, %v383_v20  ;;  %v369_v48 = vunpack.c.h.bf16 %v356_v23 }
  0x52   : > { %v408_v32 = vmul.f32 -3.0, %v392_v24  ;;  %v409_v33 = vmul.f32 -3.0, %v393_v25  ;;  %v410_v34 = vmul.f32 -3.0, %v394_v26  ;;  %v380_v35 = vsub.f32 1.0, %v364_v21  ;;  %v358_v12 = vld [vmem:[%s2592_s24 + $0x30] sm:$0xff] }
  0x53   : > { %v411_v37 = vmul.f32 -3.0, %v395_v28  ;;  %v414_v38 = vmul.f32 -3.0, %v398_v29  ;;  %v415_v39 = vmul.f32 -3.0, %v399_v30  ;;  %v381_v40 = vsub.f32 1.0, %v365_v22  ;;  %v2670_v24 = vld [vmem:[%s3322_s1 + $0x8] sm:$0xff] }
  0x54   : > { %v424_v41 = vmul.f32 1.442695, %v408_v32  ;;  %v426_v42 = vmul.f32 1.442695, %v409_v33  ;;  %v428_v43 = vmul.f32 1.442695, %v410_v34  ;;  %v374_v14 = vunpack.c.l.bf16 %v359_v11 }
  0x55   : > { %v430_v45 = vmul.f32 1.442695, %v411_v37  ;;  %v436_v46 = vmul.f32 1.442695, %v414_v38  ;;  %v438_v47 = vmul.f32 1.442695, %v415_v39  ;;  %462 = vperm.xlu0 %2180, %v458_v36   ;;  %v375_v15 = vunpack.c.h.bf16 %v359_v11 }
  0x56   : > { %2183 = vpow2.f32 %v424_v41  ;;  %v396_v49 = vand.u32 2147483647, %v380_v35  ;;  %v397_v50 = vand.u32 2147483647, %v381_v40  ;;  %v386_v51 = vsub.f32 1.0, %v370_v27 }
  0x57   : > { %2185 = vpow2.f32 %v426_v42  ;;  %v387_v52 = vsub.f32 1.0, %v371_v31  ;;  %v384_v53 = vsub.f32 1.0, %v368_v44  ;;  %v385_v54 = vsub.f32 1.0, %v369_v48 }
  0x58   : > { %2187 = vpow2.f32 %v428_v43  ;;  %v412_v55 = vmul.f32 -3.0, %v396_v49  ;;  %v413_v56 = vmul.f32 -3.0, %v397_v50  ;;  %v402_v57 = vand.u32 2147483647, %v386_v51 }
  0x59   : > { %2189 = vpow2.f32 %v430_v45  ;;  %v403_v58 = vand.u32 2147483647, %v387_v52  ;;  %v400_v59 = vand.u32 2147483647, %v384_v53  ;;  %v401_v60 = vand.u32 2147483647, %v385_v54 }
  0x5a   : > { %2191 = vpow2.f32 %v436_v46  ;;  %v432_v61 = vmul.f32 1.442695, %v412_v55  ;;  %v434_v62 = vmul.f32 1.442695, %v413_v56  ;;  %v418_v63 = vmul.f32 -3.0, %v402_v57  ;;  %v878_v55 = vld [vmem:[%s3325_s4] sm:$0xff] }
  0x5b   : > { %2193 = vpow2.f32 %v438_v47  ;;  %v419_v1 = vmul.f32 -3.0, %v403_v58  ;;  %v416_v2 = vmul.f32 -3.0, %v400_v59  ;;  %v417_v3 = vmul.f32 -3.0, %v401_v60  ;;  %881 = vperm.xlu1 %2181, %v878_v55  }
  0x5c   : > { %v2637_v4 = vpop.eup %2183  ;;  %2195 = vpow2.f32 %v432_v61  ;;  %v444_v5 = vmul.f32 1.442695, %v418_v63  ;;  %v372_v16 = vunpack.c.l.bf16 %v358_v12  ;;  %v373_v18 = vunpack.c.h.bf16 %v358_v12 }
  0x5d   : > { %v2639_v6 = vpop.eup %2185  ;;  %492 = vmatpush.msra.mxu0 %v2637_v4  ;;  %2197 = vpow2.f32 %v434_v62  ;;  %v446_v7 = vmul.f32 1.442695, %v419_v1  ;;  %v440_v8 = vmul.f32 1.442695, %v416_v2  ;;  %v442_v9 = vmul.f32 1.442695, %v417_v3 }
  0x5e   : > { %v2642_v10 = vpop.eup %2187  ;;  %515 = vmatpush.msra.mxu1 %v2639_v6  ;;  %2005 = vmatmul.msk.f32.vlgmr.msra.gmra.mxu0 %vm470_vm0, %v2635_v0  ;;  %2199 = vpow2.f32 %v444_v5  ;;  %v390_v20 = vsub.f32 1.0, %v374_v14  ;;  %v391_v21 = vsub.f32 1.0, %v375_v15  ;;  %v388_v22 = vsub.f32 1.0, %v372_v16  ;;  %v1224_v3 = vld [vmem:[%s3326_s5] sm:$0xff] }
  0x5f   : > { %v2649_v13 = vpop.eup %2189  ;;  %538 = vmatpush.msra.mxu2 %v2642_v10  ;;  %2007 = vmatmul.msk.f32.vlgmr.msra.gmra.mxu1 %vm470_vm0, %v2635_v0  ;;  %2201 = vpow2.f32 %v446_v7  ;;  %v389_v25 = vsub.f32 1.0, %v373_v18  ;;  %vm1765_vm8 = vcmask 1040384  }
  0x60   : > { %v2654_v17 = vpop.eup %2191  ;;  %561 = vmatpush.msra.mxu3 %v2649_v13  ;;  %2009 = vmatmul.msk.f32.vlgmr.msra.gmra.mxu2 %vm470_vm0, %v2635_v0  ;;  %2203 = vpow2.f32 %v440_v8  ;;  %v406_v27 = vand.u32 2147483647, %v390_v20  ;;  %v407_v28 = vand.u32 2147483647, %v391_v21  ;;  %v404_v29 = vand.u32 2147483647, %v388_v22 }
  0x61   : > { %v2659_v19 = vpop.eup %2193  ;;  %2011 = vmatmul.msk.f32.vlgmr.msra.gmra.mxu3 %vm470_vm0, %v2635_v0  ;;  %630 = vmatpush.msrb.mxu2 %v2654_v17  ;;  %2205 = vpow2.f32 %v442_v9  ;;  %v405_v31 = vand.u32 2147483647, %v389_v25 }
  0x62   : > { %v2664_v23 = vpop.eup %2195  ;;  %653 = vmatpush.msrb.mxu3 %v2659_v19  ;;  %v422_v33 = vmul.f32 -3.0, %v406_v27  ;;  %v423_v34 = vmul.f32 -3.0, %v407_v28  ;;  %v420_v35 = vmul.f32 -3.0, %v404_v29 }
  0x63   : > { %v2672_v26 = vpop.eup %2197  ;;  %584 = vmatpush.msrb.mxu0 %v2664_v23  ;;  %v421_v37 = vmul.f32 -3.0, %v405_v31  ;;  %1227 = vperm.xlu1 %2181, %v1224_v3  }
  0x64   : > { %v2675_v30 = vpop.eup %2199  ;;  %607 = vmatpush.msrb.mxu1 %v2672_v26  ;;  %v452_v39 = vmul.f32 1.442695, %v422_v33  ;;  %v454_v40 = vmul.f32 1.442695, %v423_v34  ;;  %v448_v41 = vmul.f32 1.442695, %v420_v35 }
  0x65   : > { %v2678_v32 = vpop.eup %2201  ;;  %722 = vmatpush.msra.mxu2 %v2675_v30  ;;  %v450_v42 = vmul.f32 1.442695, %v421_v37 }
  0x66   : > { %v2681_v36 = vpop.eup %2203  ;;  %2006 = vmatmul.msk.f32.gmra.mxu0 %vm470_vm0, %v2670_v24  ;;  %745 = vmatpush.msra.mxu3 %v2678_v32  ;;  %2207 = vpow2.f32 %v452_v39 }
  0x67   : > { %v2686_v38 = vpop.eup %2205  ;;  %2008 = vmatmul.msk.f32.gmra.mxu1 %vm470_vm0, %v2670_v24  ;;  %676 = vmatpush.msra.mxu0 %v2681_v36  ;;  %2209 = vpow2.f32 %v454_v40 }
  0x68   : > { %2010 = vmatmul.msk.f32.gmra.mxu2 %vm470_vm0, %v2670_v24  ;;  %699 = vmatpush.msra.mxu1 %v2686_v38  ;;  %2211 = vpow2.f32 %v448_v41 }
  0x69   : > { %2012 = vmatmul.msk.f32.gmra.mxu3 %vm470_vm0, %v2670_v24  ;;  %2213 = vpow2.f32 %v450_v42 }
  0x6c   : > { %v2698_v43 = vpop.eup %2207 }
  0x6d   : > { %v2702_v44 = vpop.eup %2209 }
  0x6e   : > { %2013 = vmatmul.msk.f32.vlgmr.msrb.gmra.mxu0 %vm470_vm0, %v2635_v0  ;;  %v2706_v45 = vpop.eup %2211 }
  0x6f   : > { %2015 = vmatmul.msk.f32.vlgmr.msrb.gmra.mxu1 %vm470_vm0, %v2635_v0  ;;  %v2711_v46 = vpop.eup %2213  ;;  %768 = vmatpush.msrb.mxu0 %v2706_v45 }
  0x70   : > { %2017 = vmatmul.msk.f32.vlgmr.msrb.gmra.mxu2 %vm470_vm0, %v2635_v0  ;;  %791 = vmatpush.msrb.mxu1 %v2711_v46 }
  0x71   : > { %2019 = vmatmul.msk.f32.vlgmr.msrb.gmra.mxu3 %vm470_vm0, %v2635_v0  ;;  %814 = vmatpush.msrb.mxu2 %v2698_v43 }
  0x72   : > { %837 = vmatpush.msrb.mxu3 %v2702_v44 }
  0x76   : > { %2014 = vmatmul.msk.f32.gmra.mxu0 %vm470_vm0, %v2670_v24 }
  0x77   : > { %2016 = vmatmul.msk.f32.gmra.mxu1 %vm470_vm0, %v2670_v24 }
  0x78   : > { %2018 = vmatmul.msk.f32.gmra.mxu2 %vm470_vm0, %v2670_v24 }
  0x79   : > { %2020 = vmatmul.msk.f32.gmra.mxu3 %vm470_vm0, %v2670_v24 }
  0x7e   : > { %2021 = vmatmul.msk.f32.vlgmr.msra.gmra.mxu0 %vm470_vm0, %v2635_v0 }
  0x7f   : > { %2023 = vmatmul.msk.f32.vlgmr.msra.gmra.mxu1 %vm470_vm0, %v2635_v0 }
  0x80   : > { %2025 = vmatmul.msk.f32.vlgmr.msra.gmra.mxu2 %vm470_vm0, %v2635_v0 }
  0x81   : > { %2027 = vmatmul.msk.f32.vlgmr.msra.gmra.mxu3 %vm470_vm0, %v2635_v0 }
  0x86   : > { %2022 = vmatmul.msk.f32.gmra.mxu0 %vm470_vm0, %v2670_v24 }
  0x87   : > { %2024 = vmatmul.msk.f32.gmra.mxu1 %vm470_vm0, %v2670_v24 }
  0x88   : > { %2026 = vmatmul.msk.f32.gmra.mxu2 %vm470_vm0, %v2670_v24 }
  0x89   : > { %2028 = vmatmul.msk.f32.gmra.mxu3 %vm470_vm0, %v2670_v24 }
  0x8e   : > { %2029 = vmatmul.msk.f32.vlgmr.msrb.gmra.mxu0 %vm470_vm0, %v2635_v0 }
  0x8f   : > { %2031 = vmatmul.msk.f32.vlgmr.msrb.gmra.mxu1 %vm470_vm0, %v2635_v0 }
  0x90   : > { %2033 = vmatmul.msk.f32.vlgmr.msrb.gmra.mxu2 %vm470_vm0, %v2635_v0 }
  0x91   : > { %2035 = vmatmul.msk.f32.vlgmr.msrb.gmra.mxu3 %vm470_vm0, %v2635_v0  ;;  %v2770_v0 = vld [vmem:[%s3324_s3] sm:$0xff] }
  0x96   : > { %2030 = vmatmul.msk.f32.gmra.mxu0 %vm470_vm0, %v2670_v24 }
  0x97   : > { %2032 = vmatmul.msk.f32.gmra.mxu1 %vm470_vm0, %v2670_v24 }
  0x98   : > { %2034 = vmatmul.msk.f32.gmra.mxu2 %vm470_vm0, %v2670_v24 }
  0x99   : > { %2036 = vmatmul.msk.f32.gmra.mxu3 %vm470_vm0, %v2670_v24 }
  0xbf   : > { %v2756_v47 = vpop.permute.xlu0 %467 }
  0xc7   : > { %v2758_v50 = vpop.permute.xlu0 %462 }
  0xdb   : > { %v494_v48 = vpop.f32.mrf.mxu0 }
  0xdc   : > { %v517_v49 = vpop.f32.mrf.mxu1  ;;  %v495_v51 = vadd.f32 %v494_v48, %v2758_v50 }
  0xdd   : > { %v518_v54 = vadd.f32 %v517_v49, %v2758_v50 }
  0xde   : > { %v845_v61 = vmax.f32 %v495_v51, 0.0 }
  0xdf   : > { %v846_v63 = vmax.f32 %v518_v54, 0.0 }
  0xe3   : > { %v540_v52 = vpop.f32.mrf.mxu2  ;;  %v497_v53 = vpop.f32.mrf.mxu0 }
  0xe4   : > { %v563_v56 = vpop.f32.mrf.mxu3  ;;  %v498_v57 = vadd.f32 %v497_v53, %v2756_v47  ;;  %v520_v58 = vpop.f32.mrf.mxu1  ;;  %v541_v5 = vadd.f32 %v540_v52, %v2758_v50 }
  0xe5   : > { %v521_v59 = vadd.f32 %v520_v58, %v2756_v47  ;;  %v564_v11 = vadd.f32 %v563_v56, %v2758_v50 }
  0xe6   : > { %v861_v60 = vmax.f32 %v498_v57, 0.0  ;;  %v847_v16 = vmax.f32 %v541_v5, 0.0 }
  0xe7   : > { %v862_v62 = vmax.f32 %v521_v59, 0.0  ;;  %v848_v18 = vmax.f32 %v564_v11, 0.0 }
  0xe8   : > { %902 = vmatpush.msra.mxu0 %v861_v60 }
  0xe9   : > { %922 = vmatpush.msra.mxu1 %v862_v62  ;;  %v1342_v62 = vld [vmem:[#allocation3] sm:$0x1] }
  0xea   : > { %903 = vmatpush.msra.mxu0 %v845_v61  ;;  %1345 = vperm.xlu2 %2182, %v1342_v62  }
  0xeb   : > { %v543_v1 = vpop.f32.mrf.mxu2  ;;  %v586_v2 = vpop.f32.mrf.mxu0  ;;  %923 = vmatpush.msra.mxu1 %v846_v63  ;;  %2037 = vmatmul.msk.f32.vlgmr.msra.gmra.mxu0 %vm884_vm1, %v2770_v0 }
  0xec   : > { %v544_v7 = vadd.f32 %v543_v1, %v2756_v47  ;;  %v566_v8 = vpop.f32.mrf.mxu3  ;;  %v609_v9 = vpop.f32.mrf.mxu1  ;;  %2038 = vmatmul.msk.f32.vlgmr.msra.gmra.mxu1 %vm884_vm1, %v2770_v0  ;;  %v587_v20 = vadd.f32 %v586_v2, %v2758_v50 }
  0xed   : > { %v567_v12 = vadd.f32 %v566_v8, %v2756_v47  ;;  %v610_v21 = vadd.f32 %v609_v9, %v2758_v50 }
  0xee   : > { %v863_v14 = vmax.f32 %v544_v7, 0.0  ;;  %v849_v31 = vmax.f32 %v587_v20, 0.0 }
  0xef   : > { %v864_v15 = vmax.f32 %v567_v12, 0.0  ;;  %v850_v34 = vmax.f32 %v610_v21, 0.0 }
  0xf0   : > { %942 = vmatpush.msra.mxu2 %v863_v14 }
  0xf1   : > { %962 = vmatpush.msra.mxu3 %v864_v15 }
  0xf2   : > { %943 = vmatpush.msra.mxu2 %v847_v16 }
  0xf3   : > { %963 = vmatpush.msra.mxu3 %v848_v18  ;;  %v632_v22 = vpop.f32.mrf.mxu2  ;;  %v589_v24 = vpop.f32.mrf.mxu0  ;;  %2039 = vmatmul.msk.f32.vlgmr.msra.gmra.mxu2 %vm884_vm1, %v2770_v0 }
  0xf4   : > { %v655_v25 = vpop.f32.mrf.mxu3  ;;  %v590_v27 = vadd.f32 %v589_v24, %v2756_v47  ;;  %v612_v28 = vpop.f32.mrf.mxu1  ;;  %2040 = vmatmul.msk.f32.vlgmr.msra.gmra.mxu3 %vm884_vm1, %v2770_v0  ;;  %v633_v40 = vadd.f32 %v632_v22, %v2758_v50 }
  0xf5   : > { %v613_v29 = vadd.f32 %v612_v28, %v2756_v47  ;;  %v656_v49 = vadd.f32 %v655_v25, %v2758_v50 }
  0xf6   : > { %v865_v33 = vmax.f32 %v590_v27, 0.0  ;;  %v851_v54 = vmax.f32 %v633_v40, 0.0 }
  0xf7   : > { %v866_v35 = vmax.f32 %v613_v29, 0.0  ;;  %v852_v55 = vmax.f32 %v656_v49, 0.0 }
  0xf8   : > { %982 = vmatpush.msrb.mxu0 %v865_v33 }
  0xf9   : > { %1002 = vmatpush.msrb.mxu1 %v866_v35 }
  0xfa   : > { %983 = vmatpush.msrb.mxu0 %v849_v31 }
  0xfb   : > { %v635_v37 = vpop.f32.mrf.mxu2  ;;  %v678_v39 = vpop.f32.mrf.mxu0  ;;  %1003 = vmatpush.msrb.mxu1 %v850_v34  ;;  %2041 = vmatmul.msk.f32.vlgmr.msrb.gmra.mxu0 %vm884_vm1, %v2770_v0 }
  0xfc   : > { %v636_v41 = vadd.f32 %v635_v37, %v2756_v47  ;;  %v658_v42 = vpop.f32.mrf.mxu3  ;;  %v701_v48 = vpop.f32.mrf.mxu1  ;;  %2042 = vmatmul.msk.f32.vlgmr.msrb.gmra.mxu1 %vm884_vm1, %v2770_v0  ;;  %v679_v58 = vadd.f32 %v678_v39, %v2758_v50 }
  0xfd   : > { %v659_v51 = vadd.f32 %v658_v42, %v2756_v47  ;;  %v702_v63 = vadd.f32 %v701_v48, %v2758_v50 }
  0xfe   : > { %v867_v52 = vmax.f32 %v636_v41, 0.0  ;;  %v853_v5 = vmax.f32 %v679_v58, 0.0  ;;  %v2835_v58 = vpop.permute.xlu1 %881 }
  0xff   : > { %v868_v53 = vmax.f32 %v659_v51, 0.0  ;;  %v854_v7 = vmax.f32 %v702_v63, 0.0 }
 0x100   : > { %1022 = vmatpush.msrb.mxu2 %v867_v52 }
 0x101   : > { %1042 = vmatpush.msrb.mxu3 %v868_v53 }
 0x102   : > { %1023 = vmatpush.msrb.mxu2 %v851_v54 }
 0x103   : > { %1043 = vmatpush.msrb.mxu3 %v852_v55  ;;  %v724_v56 = vpop.f32.mrf.mxu2  ;;  %2043 = vmatmul.msk.f32.vlgmr.msrb.gmra.mxu2 %vm884_vm1, %v2770_v0  ;;  %v681_v57 = vpop.f32.mrf.mxu0 }
 0x104   : > { %v747_v59 = vpop.f32.mrf.mxu3  ;;  %2044 = vmatmul.msk.f32.vlgmr.msrb.gmra.mxu3 %vm884_vm1, %v2770_v0  ;;  %v682_v60 = vadd.f32 %v681_v57, %v2756_v47  ;;  %v704_v61 = vpop.f32.mrf.mxu1  ;;  %v725_v11 = vadd.f32 %v724_v56, %v2758_v50 }
 0x105   : > { %v705_v1 = vadd.f32 %v704_v61, %v2756_v47  ;;  %v748_v16 = vadd.f32 %v747_v59, %v2758_v50 }
 0x106   : > { %v869_v2 = vmax.f32 %v682_v60, 0.0  ;;  %v855_v22 = vmax.f32 %v725_v11, 0.0  ;;  %v2839_v62 = vpop.permute.xlu1 %1227 }
 0x107   : > { %v870_v3 = vmax.f32 %v705_v1, 0.0  ;;  %v856_v24 = vmax.f32 %v748_v16, 0.0 }
 0x108   : > { %1062 = vmatpush.msra.mxu0 %v869_v2 }
 0x109   : > { %1082 = vmatpush.msra.mxu1 %v870_v3 }
 0x10a   : > { %1063 = vmatpush.msra.mxu0 %v853_v5 }
 0x10b   : > { %v727_v8 = vpop.f32.mrf.mxu2  ;;  %1083 = vmatpush.msra.mxu1 %v854_v7  ;;  %v770_v9 = vpop.f32.mrf.mxu0  ;;  %2045 = vmatmul.msk.f32.vlgmr.msra.gmra.mxu0 %vm884_vm1, %v2770_v0 }
 0x10c   : > { %v728_v12 = vadd.f32 %v727_v8, %v2756_v47  ;;  %v750_v14 = vpop.f32.mrf.mxu3  ;;  %v793_v15 = vpop.f32.mrf.mxu1  ;;  %2046 = vmatmul.msk.f32.vlgmr.msra.gmra.mxu1 %vm884_vm1, %v2770_v0  ;;  %v771_v28 = vadd.f32 %v770_v9, %v2758_v50 }
 0x10d   : > { %v751_v18 = vadd.f32 %v750_v14, %v2756_v47  ;;  %v794_v34 = vadd.f32 %v793_v15, %v2758_v50 }
 0x10e   : > { %v871_v20 = vmax.f32 %v728_v12, 0.0  ;;  %v857_v40 = vmax.f32 %v771_v28, 0.0 }
 0x10f   : > { %v872_v21 = vmax.f32 %v751_v18, 0.0  ;;  %v858_v41 = vmax.f32 %v794_v34, 0.0 }
 0x110   : > { %1102 = vmatpush.msra.mxu2 %v871_v20 }
 0x111   : > { %1122 = vmatpush.msra.mxu3 %v872_v21 }
 0x112   : > { %1103 = vmatpush.msra.mxu2 %v855_v22 }
 0x113   : > { %1123 = vmatpush.msra.mxu3 %v856_v24  ;;  %v816_v25 = vpop.f32.mrf.mxu2  ;;  %2047 = vmatmul.msk.f32.vlgmr.msra.gmra.mxu2 %vm884_vm1, %v2770_v0  ;;  %v773_v27 = vpop.f32.mrf.mxu0 }
 0x114   : > { %v839_v29 = vpop.f32.mrf.mxu3  ;;  %2048 = vmatmul.msk.f32.vlgmr.msra.gmra.mxu3 %vm884_vm1, %v2770_v0  ;;  %v774_v31 = vadd.f32 %v773_v27, %v2756_v47  ;;  %v796_v33 = vpop.f32.mrf.mxu1  ;;  %v817_v48 = vadd.f32 %v816_v25, %v2758_v50 }
 0x115   : > { %v797_v35 = vadd.f32 %v796_v33, %v2756_v47  ;;  %v840_v52 = vadd.f32 %v839_v29, %v2758_v50 }
 0x116   : > { %v873_v37 = vmax.f32 %v774_v31, 0.0  ;;  %v859_v56 = vmax.f32 %v817_v48, 0.0 }
 0x117   : > { %v874_v39 = vmax.f32 %v797_v35, 0.0  ;;  %v860_v57 = vmax.f32 %v840_v52, 0.0 }
 0x118   : > { %1142 = vmatpush.msrb.mxu0 %v873_v37 }
 0x119   : > { %1162 = vmatpush.msrb.mxu1 %v874_v39 }
 0x11a   : > { %1143 = vmatpush.msrb.mxu0 %v857_v40 }
 0x11b   : > { %v819_v42 = vpop.f32.mrf.mxu2  ;;  %1163 = vmatpush.msrb.mxu1 %v858_v41  ;;  %2049 = vmatmul.msk.f32.vlgmr.msrb.gmra.mxu0 %vm884_vm1, %v2770_v0 }
 0x11c   : > { %v820_v49 = vadd.f32 %v819_v42, %v2756_v47  ;;  %v842_v51 = vpop.f32.mrf.mxu3  ;;  %2050 = vmatmul.msk.f32.vlgmr.msrb.gmra.mxu1 %vm884_vm1, %v2770_v0 }
 0x11d   : > { %v843_v53 = vadd.f32 %v842_v51, %v2756_v47 }
 0x11e   : > { %v875_v54 = vmax.f32 %v820_v49, 0.0 }
 0x11f   : > { %v876_v55 = vmax.f32 %v843_v53, 0.0 }
 0x120   : > { %1182 = vmatpush.msrb.mxu2 %v875_v54 }
 0x121   : > { %1202 = vmatpush.msrb.mxu3 %v876_v55 }
 0x122   : > { %1183 = vmatpush.msrb.mxu2 %v859_v56 }
 0x123   : > { %1203 = vmatpush.msrb.mxu3 %v860_v57  ;;  %2051 = vmatmul.msk.f32.vlgmr.msrb.gmra.mxu2 %vm884_vm1, %v2770_v0 }
 0x124   : > { %2052 = vmatmul.msk.f32.vlgmr.msrb.gmra.mxu3 %vm884_vm1, %v2770_v0 }
 0x144   : > { %v1346_v11 = vpop.permute.xlu2 %1345 }
 0x145   : > { %v2845_v24 = vperm.slane %v1346_v11, 0 }
 0x168   : > { %v905_v59 = vpop.f32.mrf.mxu0 }
 0x169   : > { %v906_v50 = vadd.f32 %v905_v59, %v2835_v58  ;;  %v925_v47 = vpop.f32.mrf.mxu1 }
 0x16a   : > { %v926_v60 = vadd.f32 %v925_v47, %v2835_v58 }
 0x16b   : > { %v1208_v61 = vmax.f32 %v906_v50, 0.0 }
 0x16c   : > { %v1209_v63 = vmax.f32 %v926_v60, 0.0 }
 0x16d   : > { %v1230_v1 = vmul.f32 %v2839_v62, %v1208_v61 }
 0x16e   : > { %v1231_v2 = vmul.f32 %v2839_v62, %v1209_v63 }
 0x16f   : > { %v1246_v3 = vrot.slane %v1230_v1, 4 }
 0x170   : > { %v1252_v5 = vrot.slane %v1231_v2, 4 }
 0x171   : > { %v1247_v7 = vadd.f32 %v1246_v3, %v1230_v1 }
 0x172   : > { %v1253_v0 = vadd.f32 %v1252_v5, %v1231_v2 }
 0x173   : > { %v1248_v8 = vrot.slane %v1247_v7, 2 }
 0x174   : > { %v1254_v9 = vrot.slane %v1253_v0, 2 }
 0x175   : > { %v1249_v12 = vadd.f32 %v1248_v8, %v1247_v7 }
 0x176   : > { %v945_v14 = vpop.f32.mrf.mxu2  ;;  %v1255_v15 = vadd.f32 %v1254_v9, %v1253_v0 }
 0x177   : > { %v946_v16 = vadd.f32 %v945_v14, %v2835_v58  ;;  %v965_v18 = vpop.f32.mrf.mxu3  ;;  %v1250_v20 = vrot.slane %v1249_v12, 1 }
 0x178   : > { %v966_v21 = vadd.f32 %v965_v18, %v2835_v58  ;;  %v985_v22 = vpop.f32.mrf.mxu0  ;;  %v1256_v25 = vrot.slane %v1255_v15, 1 }
 0x179   : > { %v1210_v27 = vmax.f32 %v946_v16, 0.0  ;;  %v986_v28 = vadd.f32 %v985_v22, %v2835_v58  ;;  %v1005_v29 = vpop.f32.mrf.mxu1  ;;  %v1251_v31 = vadd.f32 %v1250_v20, %v1249_v12 }
 0x17a   : > { %v1211_v33 = vmax.f32 %v966_v21, 0.0  ;;  %v1006_v34 = vadd.f32 %v1005_v29, %v2835_v58  ;;  %v1257_v35 = vadd.f32 %v1256_v25, %v1255_v15 }
 0x17b   : > { %v1232_v37 = vmul.f32 %v2839_v62, %v1210_v27  ;;  %v1212_v39 = vmax.f32 %v986_v28, 0.0  ;;  %v1349_v40 = vadd.f32 %v2845_v24, %v1251_v31 }
 0x17c   : > { %v1233_v41 = vmul.f32 %v2839_v62, %v1211_v33  ;;  %v1213_v42 = vmax.f32 %v1006_v34, 0.0  ;;  %v1350_v48 = vadd.f32 %v2845_v24, %v1257_v35 }
 0x17d   : > { %v1258_v49 = vrot.slane %v1232_v37, 4  ;;  %v1234_v51 = vmul.f32 %v2839_v62, %v1212_v39  ;;  %v2053_v52 = vmul.f32 -1.442695, %v1349_v40 }
 0x17e   : > { %v1264_v53 = vrot.slane %v1233_v41, 4  ;;  %v1235_v54 = vmul.f32 %v2839_v62, %v1213_v42  ;;  %v2054_v55 = vmul.f32 -1.442695, %v1350_v48 }
 0x17f   : > { %v1259_v56 = vadd.f32 %v1258_v49, %v1232_v37  ;;  %2215 = vpow2.f32 %v2053_v52  ;;  %v1270_v50 = vrot.slane %v1234_v51, 4 }
 0x180   : > { %v1265_v57 = vadd.f32 %v1264_v53, %v1233_v41  ;;  %2217 = vpow2.f32 %v2054_v55  ;;  %v1276_v47 = vrot.slane %v1235_v54, 4 }
 0x181   : > { %v1260_v59 = vrot.slane %v1259_v56, 2  ;;  %v1271_v63 = vadd.f32 %v1270_v50, %v1234_v51 }
 0x182   : > { %v1266_v60 = vrot.slane %v1265_v57, 2  ;;  %v1277_v3 = vadd.f32 %v1276_v47, %v1235_v54 }
 0x183   : > { %v1261_v1 = vadd.f32 %v1260_v59, %v1259_v56  ;;  %v1272_v15 = vrot.slane %v1271_v63, 2 }
 0x184   : > { %v1267_v11 = vadd.f32 %v1266_v60, %v1265_v57  ;;  %v1278_v21 = vrot.slane %v1277_v3, 2 }
 0x185   : > { %v2216_v61 = vpop.eup %2215  ;;  %v1262_v20 = vrot.slane %v1261_v1, 1  ;;  %v2862_v35 = vadd.f32 %v1272_v15, %v1271_v63 }
 0x186   : > { %v2218_v2 = vpop.eup %2217  ;;  %v1025_v5 = vpop.f32.mrf.mxu2  ;;  %v1413_v7 = vadd.f32 1.0, %v2216_v61  ;;  %v1268_v29 = vrot.slane %v1267_v11, 1  ;;  %v2865_v41 = vadd.f32 %v1278_v21, %v1277_v3 }
 0x187   : > { %v1026_v0 = vadd.f32 %v1025_v5, %v2835_v58  ;;  %v1045_v8 = vpop.f32.mrf.mxu3  ;;  %v2856_v9 = vadd.f32 1.0, %v2218_v2  ;;  %v1263_v39 = vadd.f32 %v1262_v20, %v1261_v1 }
 0x188   : > { %v1046_v12 = vadd.f32 %v1045_v8, %v2835_v58  ;;  %v1065_v14 = vpop.f32.mrf.mxu0  ;;  %2219 = vrcp.f32 %v1413_v7  ;;  %v1440_v28 = vand.u32 2147483648, %v1413_v7  ;;  %v1438_v34 = vand.u32 2147483647, %v1413_v7 }
 0x189   : > { %v1085_v16 = vpop.f32.mrf.mxu1  ;;  %v1066_v18 = vadd.f32 %v1065_v14, %v2835_v58  ;;  %v1214_v22 = vmax.f32 %v1026_v0, 0.0  ;;  %2221 = vrcp.f32 %v2856_v9  ;;  %vm1434_vm2 = vweird.f32 %v1413_v7 }
 0x18a   : > { %v1086_v25 = vadd.f32 %v1085_v16, %v2835_v58  ;;  %v1215_v31 = vmax.f32 %v1046_v12, 0.0  ;;  %v1441_v52 = vor.u32 1.1754944e-38, %v1440_v28  ;;  %v1269_v53 = vadd.f32 %v1268_v29, %v1267_v11 }
 0x18b   : > { %v1216_v27 = vmax.f32 %v1066_v18, 0.0  ;;  %v1236_v42 = vmul.f32 %v2839_v62, %v1214_v22  ;;  %vm2872_vm3 = vcmp.eq.f32.partialorder %v1438_v34, 8.507059e+37  ;;  %vm1449_vm4 = vweird.f32 %v2856_v9 }
 0x18c   : > { %v1217_v33 = vmax.f32 %v1086_v25, 0.0  ;;  %v2870_v54 = vmul.f32 %v2839_v62, %v1215_v31  ;;  %v1351_v47 = vadd.f32 %v2845_v24, %v1263_v39  ;;  %v1453_v1 = vand.u32 2147483647, %v2856_v9 }
 0x18d   : > { %v1238_v37 = vmul.f32 %v2839_v62, %v1216_v27  ;;  %v1282_v60 = vrot.slane %v1236_v42, 4  ;;  %v1455_v5 = vand.u32 2147483648, %v2856_v9  ;;  %v1352_v0 = vadd.f32 %v2845_v24, %v1269_v53 }
 0x18e   : > { %v2220_v40 = vpop.eup %2219  ;;  %v1239_v48 = vmul.f32 %v2839_v62, %v1217_v33  ;;  %v2055_v14 = vmul.f32 -1.442695, %v1351_v47  ;;  %v1288_v15 = vrot.slane %v2870_v54, 4  ;;  %vm1454_vm10 = vcmp.eq.f32.partialorder %v1453_v1, 8.507059e+37 }
 0x18f   : > { %v1294_v49 = vrot.slane %v1238_v37, 4  ;;  %v1430_v51 = vmul.f32 %v2220_v40, %v1413_v7  ;;  %v2222_v57 = vpop.eup %2221  ;;  %vm1435_vm5 = vweird.f32 %v2220_v40  ;;  %v2056_v25 = vmul.f32 -1.442695, %v1352_v0 }
 0x190   : > { %v1300_v55 = vrot.slane %v1239_v48, 4  ;;  %v1445_v63 = vmul.f32 %v2222_v57, %v2856_v9  ;;  %vm2883_vm6 = vmor %vm1434_vm2, %vm1435_vm5  ;;  %vm1450_vm7 = vweird.f32 %v2222_v57  ;;  %2223 = vpow2.f32 %v2055_v14 }
 0x191   : > { %v1295_v59 = vadd.f32 %v1294_v49, %v1238_v37  ;;  %v1431_v50 = vsub.f32 1.0, %v1430_v51  ;;  %vm2892_vm9 = vmor %vm1449_vm4, %vm1450_vm7  ;;  %v1456_v29 = vor.u32 1.1754944e-38, %v1455_v5  ;;  %v1283_v53 = vadd.f32 %v1282_v60, %v1236_v42 }
 0x192   : > { %v1301_v61 = vadd.f32 %v1300_v55, %v1239_v48  ;;  %v1446_v12 = vsub.f32 1.0, %v1445_v63  ;;  %v1669_v48 = vld [vmem:[%s2601_s7] sm:$0xff]  ;;  %2225 = vpow2.f32 %v2056_v25  ;;  %v1274_v60 = vrot.slane %v2862_v35, 1 }
 0x193   : > { %v1296_v2 = vrot.slane %v1295_v59, 2  ;;  %v1432_v3 = vmul.f32 %v2220_v40, %v1431_v50 }
 0x194   : > { %v1302_v8 = vrot.slane %v1301_v61, 2  ;;  %v1447_v21 = vmul.f32 %v2222_v57, %v1446_v12 }
 0x195   : > { %v1297_v16 = vadd.f32 %v1296_v2, %v1295_v59  ;;  %v1433_v18 = vadd.f32 %v2220_v40, %v1432_v3 }
 0x196   : > { %v1303_v20 = vadd.f32 %v1302_v8, %v1301_v61  ;;  %v1105_v22 = vpop.f32.mrf.mxu2  ;;  %v1448_v39 = vadd.f32 %v2222_v57, %v1447_v21  ;;  %v2224_v63 = vpop.eup %2223 }
 0x197   : > { %v1298_v27 = vrot.slane %v1297_v16, 1  ;;  %v1437_v7 = vsel %vm2883_vm6, %v2220_v40, %v1433_v18  ;;  %v1106_v31 = vadd.f32 %v1105_v22, %v2835_v58  ;;  %v1125_v33 = vpop.f32.mrf.mxu3  ;;  %v2911_v5 = vadd.f32 1.0, %v2224_v63 }
 0x198   : > { %v1304_v34 = vrot.slane %v1303_v20, 1  ;;  %v1442_v37 = vsel %vm2872_vm3, %v1441_v52, %v1437_v7  ;;  %v1126_v51 = vadd.f32 %v1125_v33, %v2835_v58  ;;  %v1452_v59 = vsel %vm2892_vm9, %v2222_v57, %v1448_v39  ;;  %v1670_v52 = vld [vmem:[%s2601_s7 + $0x8] sm:$0xff]  ;;  %v1145_v0 = vpop.f32.mrf.mxu0  ;;  %v2226_v21 = vpop.eup %2225 }
 0x199   : > { %v1299_v49 = vadd.f32 %v1298_v27, %v1297_v16  ;;  %v1685_v40 = vmul.f32 %v2637_v4, %v1442_v37  ;;  %v1218_v9 = vmax.f32 %v1106_v31, 0.0  ;;  %v1457_v56 = vsel %vm1454_vm10, %v1456_v29, %v1452_v59 }
 0x19a   : > { %v1305_v55 = vadd.f32 %v1304_v34, %v1303_v20  ;;  %v1686_v1 = vmul.f32 %v2639_v6, %v1457_v56  ;;  %v1751_v2 = vrot.slane %v1457_v56, 7  ;;  %v1219_v42 = vmax.f32 %v1126_v51, 0.0  ;;  %v1165_v20 = vpop.f32.mrf.mxu1 }
 0x19b   : > { %v1357_v50 = vadd.f32 %v2845_v24, %v1299_v49  ;;  %v1701_v47 = vadd.f32 %v1685_v40, %v1669_v48  ;;  %v1240_v61 = vmul.f32 %v2839_v62, %v1218_v9  ;;  %v1280_v6 = vrot.slane %v2865_v41, 1 }
 0x19c   : > { %v1358_v4 = vadd.f32 %v2845_v24, %v1305_v55  ;;  %v1702_v11 = vadd.f32 %v1686_v1, %v1670_v52  ;;  %v2914_v12 = vsel %vm1765_vm8, %v1442_v37, %v1751_v2  ;;  %v1241_v14 = vmul.f32 %v2839_v62, %v1219_v42 }
 0x19d   : > { %v2061_v3 = vmul.f32 -1.442695, %v1357_v50  ;;  %1717 = vst [vmem:[%s2601_s7] sm:$0xff] %v1701_v47  ;;  %v1306_v57 = vrot.slane %v1240_v61, 4  ;;  %v2919_v16 = vadd.f32 %v1288_v15, %v2870_v54  ;;  %v1284_v22 = vrot.slane %v1283_v53, 2 }
 0x19e   : > { %v2062_v8 = vmul.f32 -1.442695, %v1358_v4  ;;  %1718 = vst [vmem:[%s2601_s7 + $0x8] sm:$0xff] %v1702_v11  ;;  %v1312_v25 = vrot.slane %v1241_v14, 4  ;;  %v1146_v27 = vadd.f32 %v1145_v0, %v2835_v58  ;;  %v1275_v7 = vadd.f32 %v1274_v60, %v2862_v35 }
 0x19f   : > { %2227 = vpow2.f32 %v2061_v3  ;;  %v1307_v18 = vadd.f32 %v1306_v57, %v1240_v61  ;;  %v2924_v29 = vadd.f32 1.0, %v2226_v21  ;;  %v1166_v15 = vadd.f32 %v1165_v20, %v2835_v58  ;;  %v1671_v57 = vld [vmem:[%s2601_s7 + $0x10] sm:$0xff] }
 0x1a0   : > { %2229 = vpow2.f32 %v2062_v8  ;;  %v1313_v31 = vadd.f32 %v1312_v25, %v1241_v14  ;;  %v1220_v54 = vmax.f32 %v1146_v27, 0.0  ;;  %v1281_v33 = vadd.f32 %v1280_v6, %v2865_v41 }
 0x1a1   : > { %v1308_v28 = vrot.slane %v1307_v18, 2  ;;  %2231 = vrcp.f32 %v2911_v5  ;;  %v1470_v37 = vand.u32 2147483648, %v2911_v5  ;;  %v2931_v39 = vadd.f32 %v1284_v22, %v1283_v53 }
 0x1a2   : > { %2233 = vrcp.f32 %v2924_v29  ;;  %v1290_v35 = vrot.slane %v2919_v16, 2  ;;  %v1314_v48 = vrot.slane %v1313_v31, 2  ;;  %v1485_v49 = vand.u32 2147483648, %v2924_v29 }
 0x1a3   : > { %v1309_v34 = vadd.f32 %v1308_v28, %v1307_v18  ;;  %v1468_v51 = vand.u32 2147483647, %v2911_v5  ;;  %v1483_v55 = vand.u32 2147483647, %v2924_v29  ;;  %v1242_v41 = vmul.f32 %v2839_v62, %v1220_v54 }
 0x1a4   : > { %v1315_v56 = vadd.f32 %v1314_v48, %v1313_v31  ;;  %v1221_v52 = vmax.f32 %v1166_v15, 0.0  ;;  %v1353_v53 = vadd.f32 %v2845_v24, %v1275_v7  ;;  %vm1464_vm11 = vweird.f32 %v2911_v5 }
 0x1a5   : > { %v2228_v40 = vpop.eup %2227  ;;  %v1310_v9 = vrot.slane %v1309_v34, 1  ;;  %v1471_v63 = vor.u32 1.1754944e-38, %v1470_v37  ;;  %vm1479_vm12 = vweird.f32 %v2924_v29  ;;  %v2946_v1 = vor.u32 1.1754944e-38, %v1485_v49 }
 0x1a6   : > { %v2230_v59 = vpop.eup %2229  ;;  %v2938_v50 = vadd.f32 1.0, %v2228_v40  ;;  %v1354_v2 = vadd.f32 %v2845_v24, %v1281_v33  ;;  %vm2954_vm13 = vcmp.eq.f32.partialorder %v1468_v51, 8.507059e+37  ;;  %v1318_v0 = vrot.slane %v1242_v41, 4 }
 0x1a7   : > { %v2941_v47 = vadd.f32 1.0, %v2230_v59  ;;  %v1311_v61 = vadd.f32 %v1310_v9, %v1309_v34  ;;  %v2232_v4 = vpop.eup %2231  ;;  %v1316_v11 = vrot.slane %v1315_v56, 1  ;;  %vm2959_vm14 = vcmp.eq.f32.partialorder %v1483_v55, 8.507059e+37 }
 0x1a8   : > { %2235 = vrcp.f32 %v2938_v50  ;;  %v2949_v42 = vpop.eup %2233  ;;  %v1558_v60 = vand.u32 2147483647, %v2938_v50  ;;  %v1560_v3 = vand.u32 2147483648, %v2938_v50  ;;  %v1243_v6 = vmul.f32 %v2839_v62, %v1221_v52 }
 0x1a9   : > { %2237 = vrcp.f32 %v2941_v47  ;;  %v1359_v8 = vadd.f32 %v2845_v24, %v1311_v61  ;;  %v2057_v18 = vmul.f32 -1.442695, %v1353_v53  ;;  %vm1569_vm15 = vweird.f32 %v2941_v47 }
 0x1aa   : > { %v1575_v20 = vand.u32 2147483648, %v2941_v47  ;;  %vm1554_vm0 = vweird.f32 %v2938_v50  ;;  %v1460_v21 = vmul.f32 %v2232_v4, %v2911_v5  ;;  %v1573_v22 = vand.u32 2147483647, %v2941_v47 }
 0x1ab   : > { %v2063_v25 = vmul.f32 -1.442695, %v1359_v8  ;;  %v1317_v27 = vadd.f32 %v1316_v11, %v1315_v56  ;;  %v1475_v7 = vmul.f32 %v2949_v42, %v2924_v29  ;;  %vm2971_vm1 = vcmp.eq.f32.partialorder %v1558_v60, 8.507059e+37 }
 0x1ac   : > { %v1561_v31 = vor.u32 1.1754944e-38, %v1560_v3  ;;  %v1461_v54 = vsub.f32 1.0, %v1460_v21  ;;  %vm1465_vm2 = vweird.f32 %v2232_v4  ;;  %v1319_v15 = vadd.f32 %v1318_v0, %v1242_v41 }
 0x1ad   : > { %2239 = vpow2.f32 %v2063_v25  ;;  %v1360_v34 = vadd.f32 %v2845_v24, %v1317_v27  ;;  %v1476_v37 = vsub.f32 1.0, %v1475_v7  ;;  %vm1480_vm3 = vweird.f32 %v2949_v42  ;;  %vm2981_vm4 = vmor %vm1464_vm11, %vm1465_vm2 }
 0x1ae   : > { %v2236_v33 = vpop.eup %2235  ;;  %v1576_v49 = vor.u32 1.1754944e-38, %v1575_v20  ;;  %v1462_v9 = vmul.f32 %v2232_v4, %v1461_v54  ;;  %v1320_v51 = vrot.slane %v1319_v15, 2  ;;  %v1324_v52 = vrot.slane %v1243_v6, 4  ;;  %vm2988_vm6 = vmor %vm1479_vm12, %vm1480_vm3 }
 0x1af   : > { %v2238_v48 = vpop.eup %2237  ;;  %v1550_v40 = vmul.f32 %v2236_v33, %v2938_v50  ;;  %v2064_v59 = vmul.f32 -1.442695, %v1360_v34  ;;  %v1477_v56 = vmul.f32 %v2949_v42, %v1476_v37  ;;  %vm1555_vm5 = vweird.f32 %v2236_v33  ;;  %v1677_v34 = vld [vmem:[%s2601_s7 + $0x40] sm:$0xff] }
 0x1b0   : > { %v1565_v55 = vmul.f32 %v2238_v48, %v2941_v47  ;;  %v1463_v61 = vadd.f32 %v2232_v4, %v1462_v9  ;;  %v2058_v3 = vmul.f32 -1.442695, %v1354_v2  ;;  %vm1570_vm7 = vweird.f32 %v2238_v48  ;;  %vm2997_vm9 = vmor %vm1554_vm0, %vm1555_vm5 }
 0x1b1   : > { %v1551_v53 = vsub.f32 1.0, %v1550_v40  ;;  %2241 = vpow2.f32 %v2064_v59  ;;  %v1478_v5 = vadd.f32 %v2949_v42, %v1477_v56  ;;  %v1321_v20 = vadd.f32 %v1320_v51, %v1319_v15  ;;  %vm3010_vm10 = vmor %vm1569_vm15, %vm1570_vm7 }
 0x1b2   : > { %v1566_v0 = vsub.f32 1.0, %v1565_v55  ;;  %v1467_v11 = vsel %vm2981_vm4, %v2232_v4, %v1463_v61  ;;  %2243 = vpow2.f32 %v2057_v18  ;;  %v1325_v4 = vadd.f32 %v1324_v52, %v1243_v6 }
 0x1b3   : > { %v1552_v8 = vmul.f32 %v2236_v33, %v1551_v53  ;;  %v2240_v21 = vpop.eup %2239  ;;  %v3003_v2 = vsel %vm2954_vm13, %v1471_v63, %v1467_v11  ;;  %v1482_v27 = vsel %vm2988_vm6, %v2949_v42, %v1478_v5  ;;  %vm1574_vm11 = vcmp.eq.f32.partialorder %v1573_v22, 8.507059e+37 }
 0x1b4   : > { %v1567_v25 = vmul.f32 %v2238_v48, %v1566_v0  ;;  %v3014_v7 = vadd.f32 1.0, %v2240_v21  ;;  %v3019_v63 = vsel %vm2959_vm14, %v2946_v1, %v1482_v27  ;;  %v1687_v42 = vmul.f32 %v2642_v10, %v3003_v2  ;;  %v1672_v10 = vld [vmem:[%s2601_s7 + $0x18] sm:$0xff] }
 0x1b5   : > { %v1553_v50 = vadd.f32 %v2236_v33, %v1552_v8  ;;  %v1688_v47 = vmul.f32 %v2649_v13, %v3019_v63  ;;  %2245 = vpow2.f32 %v2058_v3  ;;  %v1286_v54 = vrot.slane %v2931_v39, 1 }
 0x1b6   : > { %v1568_v6 = vadd.f32 %v2238_v48, %v1567_v25  ;;  %v3030_v14 = vadd.f32 %v1290_v35, %v2919_v16  ;;  %2247 = vrcp.f32 %v3014_v7  ;;  %v1703_v37 = vadd.f32 %v1687_v42, %v1671_v57  ;;  %v1678_v35 = vld [vmem:[%s2601_s7 + $0x48] sm:$0xff] }
 0x1b7   : > { %v1557_v1 = vsel %vm2997_vm9, %v2236_v33, %v1553_v50  ;;  %v2242_v22 = vpop.eup %2241  ;;  %v1322_v40 = vrot.slane %v1321_v20, 1  ;;  %v1326_v55 = vrot.slane %v1325_v4, 2  ;;  %v3054_v61 = vadd.f32 %v1286_v54, %v2931_v39  ;;  %v1205_v54 = vpop.f32.mrf.mxu3 }
 0x1b8   : > { %v1572_v15 = vsel %vm3010_vm10, %v2238_v48, %v1568_v6  ;;  %v1562_v13 = vsel %vm2971_vm1, %v1561_v31, %v1557_v1  ;;  %v2244_v9 = vpop.eup %2243  ;;  %v3043_v51 = vadd.f32 1.0, %v2242_v22  ;;  %v1704_v48 = vadd.f32 %v1688_v47, %v1672_v10  ;;  %1719 = vst [vmem:[%s2601_s7 + $0x10] sm:$0xff] %v1703_v37  ;;  %v1185_v31 = vpop.f32.mrf.mxu2 }
 0x1b9   : > { %v1577_v16 = vsel %vm1574_vm11, %v1576_v49, %v1572_v15  ;;  %v1693_v33 = vmul.f32 %v2681_v36, %v1562_v13  ;;  %v1292_v49 = vrot.slane %v3030_v14, 1  ;;  %v1323_v60 = vadd.f32 %v1322_v40, %v1321_v20 }
 0x1ba   : > { %v1694_v59 = vmul.f32 %v2686_v38, %v1577_v16  ;;  %v1758_v41 = vrot.slane %v1577_v16, 7  ;;  %2249 = vrcp.f32 %v3043_v51  ;;  %1720 = vst [vmem:[%s2601_s7 + $0x18] sm:$0xff] %v1704_v48  ;;  %v1588_v38 = vand.u32 2147483647, %v3014_v7  ;;  %v1679_v48 = vld [vmem:[%s2601_s7 + $0x50] sm:$0xff] }
 0x1bb   : > { %v1709_v28 = vadd.f32 %v1693_v33, %v1677_v34  ;;  %v2246_v56 = vpop.eup %2245  ;;  %v1327_v3 = vadd.f32 %v1326_v55, %v1325_v4  ;;  %v1590_v5 = vand.u32 2147483648, %v3014_v7  ;;  %v3061_v8 = vadd.f32 1.0, %v2244_v9 }
 0x1bc   : > { %v1710_v52 = vadd.f32 %v1694_v59, %v1678_v35  ;;  %v3050_v36 = vsel %vm1765_vm8, %v1562_v13, %v1758_v41  ;;  %v2248_v53 = vpop.eup %2247  ;;  %v1186_v11 = vadd.f32 %v1185_v31, %v2835_v58  ;;  %vm1584_vm8 = vweird.f32 %v3014_v7 }
 0x1bd   : > { %1725 = vst [vmem:[%s2601_s7 + $0x40] sm:$0xff] %v1709_v28  ;;  %v1580_v0 = vmul.f32 %v2248_v53, %v3014_v7  ;;  %v1361_v21 = vadd.f32 %v2845_v24, %v1323_v60  ;;  %v1328_v39 = vrot.slane %v1327_v3, 1  ;;  %v3066_v25 = vadd.f32 1.0, %v2246_v56 }
 0x1be   : > { %1726 = vst [vmem:[%s2601_s7 + $0x48] sm:$0xff] %v1710_v52  ;;  %v1603_v20 = vand.u32 2147483647, %v3043_v51  ;;  %v1605_v27 = vand.u32 2147483648, %v3043_v51  ;;  %2251 = vrcp.f32 %v3061_v8  ;;  %vm3071_vm12 = vcmp.eq.f32.partialorder %v1588_v38, 8.507059e+37 }
 0x1bf   : > { %v1581_v29 = vsub.f32 1.0, %v1580_v0  ;;  %v2065_v50 = vmul.f32 -1.442695, %v1361_v21  ;;  %v1329_v57 = vadd.f32 %v1328_v39, %v1327_v3  ;;  %2253 = vrcp.f32 %v3066_v25  ;;  %v1680_v21 = vld [vmem:[%s2601_s7 + $0x58] sm:$0xff] }
 0x1c0   : > { %v2250_v4 = vpop.eup %2249  ;;  %vm1585_vm13 = vweird.f32 %v2248_v53  ;;  %v1591_v6 = vor.u32 1.1754944e-38, %v1590_v5  ;;  %vm1599_vm14 = vweird.f32 %v3043_v51  ;;  %v1500_v10 = vand.u32 2147483648, %v3061_v8 }
 0x1c1   : > { %v1582_v42 = vmul.f32 %v2248_v53, %v1581_v29  ;;  %v1595_v47 = vmul.f32 %v2250_v4, %v3043_v51  ;;  %2255 = vpow2.f32 %v2065_v50  ;;  %v1362_v1 = vadd.f32 %v2845_v24, %v1329_v57  ;;  %vm1586_vm0 = vmor %vm1584_vm8, %vm1585_vm13 }
 0x1c2   : > { %vm3080_vm15 = vcmp.eq.f32.partialorder %v1603_v20, 8.507059e+37  ;;  %v1606_v34 = vor.u32 1.1754944e-38, %v1605_v27  ;;  %vm1494_vm1 = vweird.f32 %v3061_v8  ;;  %v1222_v40 = vmax.f32 %v1186_v11, 0.0 }
 0x1c3   : > { %v1583_v22 = vadd.f32 %v2248_v53, %v1582_v42  ;;  %v1596_v15 = vsub.f32 1.0, %v1595_v47  ;;  %v2066_v37 = vmul.f32 -1.442695, %v1362_v1  ;;  %v1206_v9 = vadd.f32 %v1205_v54, %v2835_v58 }
 0x1c4   : > { %v2252_v16 = vpop.eup %2251  ;;  %vm1600_vm2 = vweird.f32 %v2250_v4  ;;  %v1498_v55 = vand.u32 2147483647, %v3061_v8  ;;  %v1501_v28 = vor.u32 1.1754944e-38, %v1500_v10  ;;  %vm1509_vm3 = vweird.f32 %v3066_v25 }
 0x1c5   : > { %v1587_v35 = vsel %vm1586_vm0, %v2248_v53, %v1583_v22  ;;  %v1597_v33 = vmul.f32 %v2250_v4, %v1596_v15  ;;  %v2254_v59 = vpop.eup %2253  ;;  %2257 = vpow2.f32 %v2066_v37  ;;  %v1490_v7 = vmul.f32 %v2252_v16, %v3061_v8  ;;  %vm1601_vm4 = vmor %vm1599_vm14, %vm1600_vm2  ;;  %v1673_v22 = vld [vmem:[%s2601_s7 + $0x20] sm:$0xff] }
 0x1c6   : > { %v3091_v41 = vsel %vm3071_vm12, %v1591_v6, %v1587_v35  ;;  %v1505_v56 = vmul.f32 %v2254_v59, %v3066_v25  ;;  %vm1495_vm5 = vweird.f32 %v2252_v16  ;;  %v1244_v38 = vmul.f32 %v2839_v62, %v1222_v40  ;;  %v1674_v35 = vld [vmem:[%s2601_s7 + $0x28] sm:$0xff] }
 0x1c7   : > { %v1695_v58 = vmul.f32 %v2675_v30, %v3091_v41  ;;  %v1598_v31 = vadd.f32 %v2250_v4, %v1597_v33  ;;  %v2256_v52 = vpop.eup %2255  ;;  %v1491_v53 = vsub.f32 1.0, %v1490_v7  ;;  %v1223_v60 = vmax.f32 %v1206_v9, 0.0  ;;  %vm3117_vm6 = vmor %vm1494_vm1, %vm1495_vm5 }
 0x1c8   : > { %v3102_v5 = vadd.f32 1.0, %v2256_v52  ;;  %v1506_v30 = vsub.f32 1.0, %v1505_v56  ;;  %v1515_v29 = vand.u32 2147483648, %v3066_v25  ;;  %v1330_v51 = vrot.slane %v1244_v38, 4 }
 0x1c9   : > { %v1711_v3 = vadd.f32 %v1695_v58, %v1679_v48  ;;  %v1602_v0 = vsel %vm1601_vm4, %v2250_v4, %v1598_v31  ;;  %v1492_v39 = vmul.f32 %v2252_v16, %v1491_v53  ;;  %vm1510_vm7 = vweird.f32 %v2254_v59 }
 0x1ca   : > { %v3106_v11 = vsel %vm3080_vm15, %v1606_v34, %v1602_v0  ;;  %2259 = vrcp.f32 %v3102_v5  ;;  %v1513_v4 = vand.u32 2147483647, %v3066_v25  ;;  %v1293_v50 = vadd.f32 %v1292_v49, %v3030_v14  ;;  %vm3132_vm10 = vmor %vm1509_vm3, %vm1510_vm7 }
 0x1cb   : > { %1727 = vst [vmem:[%s2601_s7 + $0x50] sm:$0xff] %v1711_v3  ;;  %v1696_v20 = vmul.f32 %v2678_v32, %v3106_v11  ;;  %v2258_v18 = vpop.eup %2257  ;;  %v1493_v32 = vadd.f32 %v2252_v16, %v1492_v39  ;;  %vm1499_vm9 = vcmp.eq.f32.partialorder %v1498_v55, 8.507059e+37  ;;  %v1507_v57 = vmul.f32 %v2254_v59, %v1506_v30 }
 0x1cc   : > { %v3125_v6 = vadd.f32 1.0, %v2258_v18  ;;  %v1331_v8 = vadd.f32 %v1330_v51, %v1244_v38  ;;  %v1245_v47 = vmul.f32 %v2839_v62, %v1223_v60  ;;  %v1516_v14 = vor.u32 1.1754944e-38, %v1515_v29  ;;  %v1681_v18 = vld [vmem:[%s2601_s7 + $0x60] sm:$0xff] }
 0x1cd   : > { %v1712_v42 = vadd.f32 %v1696_v20, %v1680_v21  ;;  %v1497_v54 = vsel %vm3117_vm6, %v2252_v16, %v1493_v32  ;;  %v1508_v10 = vadd.f32 %v2254_v59, %v1507_v57  ;;  %vm1514_vm11 = vcmp.eq.f32.partialorder %v1513_v4, 8.507059e+37 }
 0x1ce   : > { %v3137_v49 = vsel %vm1499_vm9, %v1501_v28, %v1497_v54  ;;  %2261 = vrcp.f32 %v3125_v6  ;;  %v1355_v25 = vadd.f32 %v2845_v24, %v3054_v61  ;;  %v1332_v34 = vrot.slane %v1331_v8, 2 }
 0x1cf   : > { %1728 = vst [vmem:[%s2601_s7 + $0x58] sm:$0xff] %v1712_v42  ;;  %v1689_v62 = vmul.f32 %v2664_v23, %v3137_v49  ;;  %v1512_v13 = vsel %vm3132_vm10, %v2254_v59, %v1508_v10  ;;  %v1336_v37 = vrot.slane %v1245_v47, 4  ;;  %v1356_v40 = vadd.f32 %v2845_v24, %v1293_v50 }
 0x1d0   : > { %v2260_v15 = vpop.eup %2259  ;;  %v3149_v16 = vsel %vm1514_vm11, %v1516_v14, %v1512_v13  ;;  %v1618_v33 = vand.u32 2147483647, %v3102_v5  ;;  %v1333_v48 = vadd.f32 %v1332_v34, %v1331_v8  ;;  %v2059_v7 = vmul.f32 -1.442695, %v1355_v25  ;;  %v1682_v25 = vld [vmem:[%s2601_s7 + $0x68] sm:$0xff] }
 0x1d1   : > { %v1610_v9 = vmul.f32 %v2260_v15, %v3102_v5  ;;  %v1690_v23 = vmul.f32 %v2672_v26, %v3149_v16  ;;  %v1705_v61 = vadd.f32 %v1689_v62, %v1673_v22  ;;  %v1337_v59 = vadd.f32 %v1336_v37, %v1245_v47 }
 0x1d2   : > { %v1620_v58 = vand.u32 2147483648, %v3102_v5  ;;  %v2060_v56 = vmul.f32 -1.442695, %v1356_v40  ;;  %vm1615_vm8 = vweird.f32 %v2260_v15  ;;  %v1334_v38 = vrot.slane %v1333_v48, 1 }
 0x1d3   : > { %v1611_v55 = vsub.f32 1.0, %v1610_v9  ;;  %v1706_v31 = vadd.f32 %v1690_v23, %v1674_v35  ;;  %1721 = vst [vmem:[%s2601_s7 + $0x20] sm:$0xff] %v1705_v61  ;;  %vm1614_vm12 = vweird.f32 %v3102_v5  ;;  %vm3159_vm13 = vcmp.eq.f32.partialorder %v1618_v33, 8.507059e+37 }
 0x1d4   : > { %v2262_v28 = vpop.eup %2261  ;;  %v1338_v60 = vrot.slane %v1337_v59, 2  ;;  %2263 = vpow2.f32 %v2059_v7  ;;  %v1335_v30 = vadd.f32 %v1334_v38, %v1333_v48  ;;  %vm1616_vm14 = vmor %vm1614_vm12, %vm1615_vm8  ;;  %v1621_v21 = vor.u32 1.1754944e-38, %v1620_v58 }
 0x1d5   : > { %v1612_v52 = vmul.f32 %v2260_v15, %v1611_v55  ;;  %v1625_v53 = vmul.f32 %v2262_v28, %v3125_v6  ;;  %1722 = vst [vmem:[%s2601_s7 + $0x28] sm:$0xff] %v1706_v31  ;;  %2265 = vpow2.f32 %v2060_v56  ;;  %v1633_v39 = vand.u32 2147483647, %v3125_v6 }
 0x1d6   : > { %v1635_v29 = vand.u32 2147483648, %v3125_v6  ;;  %v1339_v51 = vadd.f32 %v1338_v60, %v1337_v59  ;;  %vm1630_vm15 = vweird.f32 %v2262_v28  ;;  %v1363_v27 = vadd.f32 %v2845_v24, %v1335_v30 }
 0x1d7   : > { %v1613_v3 = vadd.f32 %v2260_v15, %v1612_v52  ;;  %v1626_v0 = vsub.f32 1.0, %v1625_v53  ;;  %vm1629_vm0 = vweird.f32 %v3125_v6  ;;  %vm1634_vm2 = vcmp.eq.f32.partialorder %v1633_v39, 8.507059e+37 }
 0x1d8   : > { %v1340_v50 = vrot.slane %v1339_v51, 1  ;;  %v2067_v42 = vmul.f32 -1.442695, %v1363_v27  ;;  %vm1631_vm1 = vmor %vm1629_vm0, %vm1630_vm15  ;;  %v1636_v47 = vor.u32 1.1754944e-38, %v1635_v29  ;;  %v1752_v40 = vrot.slane %v3003_v2, 6  ;;  %v1675_v27 = vld [vmem:[%s2601_s7 + $0x30] sm:$0xff] }
 0x1d9   : > { %v1617_v5 = vsel %vm1616_vm14, %v2260_v15, %v1613_v3  ;;  %v1627_v20 = vmul.f32 %v2262_v28, %v1626_v0  ;;  %v1753_v9 = vrot.slane %v3019_v63, 5  ;;  %vm1767_vm3 = vcmask 1042434  }
 0x1da   : > { %v3169_v4 = vsel %vm3159_vm13, %v1621_v21, %v1617_v5  ;;  %v2264_v8 = vpop.eup %2263  ;;  %v1341_v54 = vadd.f32 %v1340_v50, %v1339_v51  ;;  %2267 = vpow2.f32 %v2067_v42  ;;  %vm1769_vm4 = vcmask 1041408  }
 0x1db   : > { %v1697_v32 = vmul.f32 %v2706_v45, %v3169_v4  ;;  %v1628_v57 = vadd.f32 %v2262_v28, %v1627_v20  ;;  %v2266_v1 = vpop.eup %2265  ;;  %v1419_v22 = vadd.f32 1.0, %v2264_v8  ;;  %vm1771_vm5 = vcmask 1044484  }
 0x1dc   : > { %v1364_v45 = vadd.f32 %v2845_v24, %v1341_v54  ;;  %v1420_v15 = vadd.f32 1.0, %v2266_v1  ;;  %v1754_v48 = vrot.slane %v3137_v49, 4  ;;  %v1755_v2 = vrot.slane %v3149_v16, 3 }
 0x1dd   : > { %v1713_v14 = vadd.f32 %v1697_v32, %v1681_v18  ;;  %v1632_v10 = vsel %vm1631_vm1, %v2262_v28, %v1628_v57  ;;  %2269 = vrcp.f32 %v1419_v22  ;;  %vm1524_vm6 = vweird.f32 %v1419_v22  ;;  %v1676_v18 = vld [vmem:[%s2601_s7 + $0x38] sm:$0xff] }
 0x1de   : > { %v3175_v62 = vsel %vm1634_vm2, %v1636_v47, %v1632_v10  ;;  %v2068_v13 = vmul.f32 -1.442695, %v1364_v45  ;;  %2271 = vrcp.f32 %v1420_v15  ;;  %v1528_v63 = vand.u32 2147483647, %v1419_v22 }
 0x1df   : > { %1729 = vst [vmem:[%s2601_s7 + $0x60] sm:$0xff] %v1713_v14  ;;  %v1698_v6 = vmul.f32 %v2711_v46, %v3175_v62  ;;  %v1768_v46 = vsel %vm1767_vm3, %v1752_v40, %v1753_v9  ;;  %v1530_v28 = vand.u32 2147483648, %v1419_v22  ;;  %vm1539_vm9 = vweird.f32 %v1420_v15 }
 0x1e0   : > { %2273 = vpow2.f32 %v2068_v13  ;;  %v2268_v37 = vpop.eup %2267  ;;  %v1543_v31 = vand.u32 2147483647, %v1420_v15  ;;  %v1545_v56 = vand.u32 2147483648, %v1420_v15  ;;  %v1770_v49 = vsel %vm1769_vm4, %v2914_v12, %v1768_v46 }
 0x1e1   : > { %v1714_v34 = vadd.f32 %v1698_v6, %v1682_v25  ;;  %v3185_v35 = vadd.f32 1.0, %v2268_v37  ;;  %v1772_v16 = vsel %vm1771_vm5, %v1754_v48, %v1755_v2  ;;  %vm1773_vm8 = vcmask 1046534   ;;  %v1683_v37 = vld [vmem:[%s2601_s7 + $0x70] sm:$0xff] }
 0x1e2   : > { %vm1529_vm12 = vcmp.eq.f32.partialorder %v1528_v63, 8.507059e+37  ;;  %v1531_v0 = vor.u32 1.1754944e-38, %v1530_v28  ;;  %vm1544_vm14 = vcmp.eq.f32.partialorder %v1543_v31, 8.507059e+37  ;;  %v1546_v30 = vor.u32 1.1754944e-38, %v1545_v56  ;;  %v1734_v31 = vld [vmem:[#allocation2 + $0x8] sm:$0xff] }
 0x1e3   : > { %1730 = vst [vmem:[%s2601_s7 + $0x68] sm:$0xff] %v1714_v34  ;;  %v2270_v24 = vpop.eup %2269  ;;  %2275 = vrcp.f32 %v3185_v35  ;;  %v1648_v12 = vand.u32 2147483647, %v3185_v35  ;;  %v1650_v51 = vand.u32 2147483648, %v3185_v35  ;;  %vm1775_vm0 = vcmask 1045508  }
 0x1e4   : > { %v2272_v33 = vpop.eup %2271  ;;  %v1520_v23 = vmul.f32 %v2270_v24, %v1419_v22  ;;  %vm1525_vm7 = vweird.f32 %v2270_v24  ;;  %vm1777_vm1 = vcmask 1043456   ;;  %vm1644_vm2 = vweird.f32 %v3185_v35 }
 0x1e5   : > { %v1535_v61 = vmul.f32 %v2272_v33, %v1420_v15  ;;  %vm1540_vm10 = vweird.f32 %v2272_v33  ;;  %vm1526_vm11 = vmor %vm1524_vm6, %vm1525_vm7  ;;  %vm1649_vm7 = vcmp.eq.f32.partialorder %v1648_v12, 8.507059e+37  ;;  %v1760_v46 = vrot.slane %v3106_v11, 5 }
 0x1e6   : > { %v2274_v55 = vpop.eup %2273  ;;  %v1521_v7 = vsub.f32 1.0, %v1520_v23  ;;  %vm1541_vm13 = vmor %vm1539_vm9, %vm1540_vm10  ;;  %v1762_v2 = vrot.slane %v3175_v62, 3 }
 0x1e7   : > { %v3191_v59 = vadd.f32 1.0, %v2274_v55  ;;  %v1536_v58 = vsub.f32 1.0, %v1535_v61  ;;  %v1761_v61 = vrot.slane %v3169_v4, 4 }
 0x1e8   : > { %v1522_v52 = vmul.f32 %v2270_v24, %v1521_v7 }
 0x1e9   : > { %v1537_v53 = vmul.f32 %v2272_v33, %v1536_v58  ;;  %2277 = vrcp.f32 %v3191_v59  ;;  %v2276_v38 = vpop.eup %2275  ;;  %v1663_v15 = vand.u32 2147483647, %v3191_v59  ;;  %v1665_v6 = vand.u32 2147483648, %v3191_v59 }
 0x1ea   : > { %v1640_v26 = vmul.f32 %v2276_v38, %v3185_v35  ;;  %v1523_v60 = vadd.f32 %v2270_v24, %v1522_v52  ;;  %vm1645_vm15 = vweird.f32 %v2276_v38  ;;  %vm1659_vm10 = vweird.f32 %v3191_v59 }
 0x1eb   : > { %v1538_v3 = vadd.f32 %v2272_v33, %v1537_v53  ;;  %vm1646_vm6 = vmor %vm1644_vm2, %vm1645_vm15  ;;  %v1666_v48 = vor.u32 1.1754944e-38, %v1665_v6  ;;  %v1782_v4 = vsel %vm1771_vm5, %v1761_v61, %v1762_v2 }
 0x1ec   : > { %v1641_v21 = vsub.f32 1.0, %v1640_v26  ;;  %v1527_v39 = vsel %vm1526_vm11, %v2270_v24, %v1523_v60 }
 0x1ed   : > { %v1542_v29 = vsel %vm1541_vm13, %v2272_v33, %v1538_v3  ;;  %v1532_v5 = vsel %vm1529_vm12, %v1531_v0, %v1527_v39  ;;  %v1759_v33 = vrot.slane %v3091_v41, 6  ;;  %vm1664_vm12 = vcmp.eq.f32.partialorder %v1663_v15, 8.507059e+37  ;;  %v1684_v41 = vld [vmem:[%s2601_s7 + $0x78] sm:$0xff] }
 0x1ee   : > { %v1547_v20 = vsel %vm1544_vm14, %v1546_v30, %v1542_v29  ;;  %v1642_v32 = vmul.f32 %v2276_v38, %v1641_v21  ;;  %v1691_v57 = vmul.f32 %v2654_v17, %v1532_v5  ;;  %v1756_v8 = vrot.slane %v1532_v5, 2 }
 0x1ef   : > { %v2278_v50 = vpop.eup %2277  ;;  %v1692_v42 = vmul.f32 %v2659_v19, %v1547_v20  ;;  %v1757_v54 = vrot.slane %v1547_v20, 1  ;;  %v1651_v17 = vor.u32 1.1754944e-38, %v1650_v51  ;;  %v1733_v19 = vld [vmem:[#allocation2] sm:$0xff]  ;;  %v1780_v11 = vsel %vm1767_vm3, %v1759_v33, %v1760_v46 }
 0x1f0   : > { %v1655_v47 = vmul.f32 %v2278_v50, %v3191_v59  ;;  %v1643_v1 = vadd.f32 %v2276_v38, %v1642_v32  ;;  %v1707_v14 = vadd.f32 %v1691_v57, %v1675_v27  ;;  %vm1660_vm9 = vweird.f32 %v2278_v50 }
 0x1f1   : > { %v1708_v10 = vadd.f32 %v1692_v42, %v1676_v18  ;;  %v1774_v25 = vsel %vm1773_vm8, %v1756_v8, %v1757_v54  ;;  %vm1661_vm11 = vmor %vm1659_vm10, %vm1660_vm9  ;;  %v1781_v62 = vsel %vm1769_vm4, %v3050_v36, %v1780_v11 }
 0x1f2   : > { %v1656_v22 = vsub.f32 1.0, %v1655_v47  ;;  %v1647_v45 = vsel %vm1646_vm6, %v2276_v38, %v1643_v1  ;;  %1723 = vst [vmem:[%s2601_s7 + $0x30] sm:$0xff] %v1707_v14  ;;  %v1776_v13 = vsel %vm1775_vm0, %v1772_v16, %v1774_v25 }
 0x1f3   : > { %v1652_v34 = vsel %vm1649_vm7, %v1651_v17, %v1647_v45  ;;  %1724 = vst [vmem:[%s2601_s7 + $0x38] sm:$0xff] %v1708_v10  ;;  %v1778_v9 = vsel %vm1777_vm1, %v1770_v49, %v1776_v13 }
 0x1f4   : > { %v1657_v40 = vmul.f32 %v2278_v50, %v1656_v22  ;;  %v1699_v35 = vmul.f32 %v2698_v43, %v1652_v34  ;;  %v1788_v24 = vadd.f32 %v1778_v9, %v1733_v19  ;;  %v1763_v63 = vrot.slane %v1652_v34, 2 }
 0x1f6   : > { %v1658_v23 = vadd.f32 %v2278_v50, %v1657_v40  ;;  %v1715_v55 = vadd.f32 %v1699_v35, %v1683_v37  ;;  %1790 = vst [vmem:[#allocation2] sm:$0xff] %v1788_v24 }
 0x1f8   : > { %v1662_v43 = vsel %vm1661_vm11, %v2278_v50, %v1658_v23  ;;  %1731 = vst [vmem:[%s2601_s7 + $0x70] sm:$0xff] %v1715_v55 }
 0x1f9   : > { %v1667_v7 = vsel %vm1664_vm12, %v1666_v48, %v1662_v43 }
 0x1fa   : > { %v1700_v28 = vmul.f32 %v2702_v44, %v1667_v7  ;;  %v1764_v59 = vrot.slane %v1667_v7, 1 }
 0x1fc   : > { %v1716_v58 = vadd.f32 %v1700_v28, %v1684_v41  ;;  %v1783_v56 = vsel %vm1773_vm8, %v1763_v63, %v1764_v59 }
 0x1fd   : > { %v1784_v52 = vsel %vm1775_vm0, %v1782_v4, %v1783_v56  ;;  %1795 = sbr.rel (%p2069_p7) target bundleno = 542 (0x21e), region = 60 }
 0x1fe   : > { %1732 = vst [vmem:[%s2601_s7 + $0x78] sm:$0xff] %v1716_v58  ;;  %v1785_v53 = vsel %vm1777_vm1, %v1781_v62, %v1784_v52 }
 0x1ff   : > { %v1789_v38 = vadd.f32 %v1785_v53, %v1734_v31 }
 0x201   : > { %1791 = vst [vmem:[#allocation2 + $0x8] sm:$0xff] %v1789_v38 }
 0x202   : > { %v1796_v44 = vld [vmem:[#allocation2] sm:$0xff]  ;;  %v1800_v16 = vld [vmem:[%s2601_s7] sm:$0xff]  ;;  %v1803_v21 = vld [vmem:[%s2601_s7 + $0x18] sm:$0xff] }
 0x203   : > { %2279 = vrcp.f32 %v1796_v44  ;;  %v1801_v26 = vld [vmem:[%s2601_s7 + $0x8] sm:$0xff]  ;;  %v1802_v60 = vld [vmem:[%s2601_s7 + $0x10] sm:$0xff]  ;;  %v1804_v39 = vld [vmem:[%s2601_s7 + $0x20] sm:$0xff] }
 0x204   : > { %v1805_v50 = vld [vmem:[%s2601_s7 + $0x28] sm:$0xff]  ;;  %v1806_v42 = vld [vmem:[%s2601_s7 + $0x30] sm:$0xff]  ;;  %v1807_v54 = vld [vmem:[%s2601_s7 + $0x38] sm:$0xff] }
 0x205   : > { %v1808_v10 = vld [vmem:[%s2601_s7 + $0x40] sm:$0xff]  ;;  %v1809_v19 = vld [vmem:[%s2601_s7 + $0x48] sm:$0xff]  ;;  %v1810_v15 = vld [vmem:[%s2601_s7 + $0x50] sm:$0xff] }
 0x206   : > { %v1811_v34 = vld [vmem:[%s2601_s7 + $0x58] sm:$0xff]  ;;  %v1812_v9 = vld [vmem:[%s2601_s7 + $0x60] sm:$0xff]  ;;  %v1813_v33 = vld [vmem:[%s2601_s7 + $0x68] sm:$0xff] }
 0x207   : > { %v1814_v61 = vld [vmem:[%s2601_s7 + $0x70] sm:$0xff]  ;;  %v1815_v2 = vld [vmem:[%s2601_s7 + $0x78] sm:$0xff] }
 0x208   : > { %v1797_v49 = vld [vmem:[#allocation2 + $0x8] sm:$0xff] }
 0x209   : > { %2281 = vrcp.f32 %v1797_v49  ;;  %v2280_v36 = vpop.eup %2279 }
 0x20a   : > { %v1818_v3 = vperm.slane %v2280_v36, 0  ;;  %v1819_v0 = vperm.slane %v2280_v36, 1  ;;  %v1820_v30 = vperm.slane %v2280_v36, 2  ;;  %v1821_v12 = vperm.slane %v2280_v36, 3 }
 0x20b   : > { %v1822_v29 = vperm.slane %v2280_v36, 4  ;;  %v1823_v51 = vperm.slane %v2280_v36, 5  ;;  %v1824_v32 = vperm.slane %v2280_v36, 6  ;;  %v1825_v8 = vperm.slane %v2280_v36, 7 }
 0x20c   : > { %v1850_v20 = vmul.f32 %v1818_v3, %v1800_v16  ;;  %v1851_v27 = vmul.f32 %v1819_v0, %v1801_v26  ;;  %v1852_v18 = vmul.f32 %v1820_v30, %v1802_v60  ;;  %v1853_v57 = vmul.f32 %v1821_v12, %v1803_v21 }
 0x20d   : > { %v1854_v47 = vmul.f32 %v1822_v29, %v1804_v39  ;;  %v1855_v14 = vmul.f32 %v1823_v51, %v1805_v50  ;;  %v1856_v22 = vmul.f32 %v1824_v32, %v1806_v42  ;;  %v1857_v45 = vmul.f32 %v1825_v8, %v1807_v54 }
 0x20e   : > { %1866 = vst [vmem:[%s2601_s7] sm:$0xff] %v1850_v20 }
 0x20f   : > { %v2282_v5 = vpop.eup %2281  ;;  %1867 = vst [vmem:[%s2601_s7 + $0x8] sm:$0xff] %v1851_v27 }
 0x210   : > { %v1826_v1 = vperm.slane %v2282_v5, 0  ;;  %v1827_v17 = vperm.slane %v2282_v5, 1  ;;  %1868 = vst [vmem:[%s2601_s7 + $0x10] sm:$0xff] %v1852_v18  ;;  %v1828_v25 = vperm.slane %v2282_v5, 2  ;;  %v1829_v6 = vperm.slane %v2282_v5, 3 }
 0x211   : > { %1869 = vst [vmem:[%s2601_s7 + $0x18] sm:$0xff] %v1853_v57  ;;  %v1830_v37 = vperm.slane %v2282_v5, 4  ;;  %v1831_v35 = vperm.slane %v2282_v5, 5  ;;  %v1832_v46 = vperm.slane %v2282_v5, 6  ;;  %v1833_v55 = vperm.slane %v2282_v5, 7 }
 0x212   : > { %1870 = vst [vmem:[%s2601_s7 + $0x20] sm:$0xff] %v1854_v47  ;;  %v1858_v13 = vmul.f32 %v1826_v1, %v1808_v10  ;;  %v1859_v40 = vmul.f32 %v1827_v17, %v1809_v19  ;;  %v1860_v24 = vmul.f32 %v1828_v25, %v1810_v15  ;;  %v1861_v23 = vmul.f32 %v1829_v6, %v1811_v34 }
 0x213   : > { %1871 = vst [vmem:[%s2601_s7 + $0x28] sm:$0xff] %v1855_v14  ;;  %v1862_v48 = vmul.f32 %v1830_v37, %v1812_v9  ;;  %v1863_v63 = vmul.f32 %v1831_v35, %v1813_v33  ;;  %v1864_v43 = vmul.f32 %v1832_v46, %v1814_v61  ;;  %v1865_v7 = vmul.f32 %v1833_v55, %v1815_v2 }
 0x214   : > { %1872 = vst [vmem:[%s2601_s7 + $0x30] sm:$0xff] %v1856_v22 }
 0x215   : > { %1873 = vst [vmem:[%s2601_s7 + $0x38] sm:$0xff] %v1857_v45 }
 0x216   : > { %1874 = vst [vmem:[%s2601_s7 + $0x40] sm:$0xff] %v1858_v13 }
 0x217   : > { %1875 = vst [vmem:[%s2601_s7 + $0x48] sm:$0xff] %v1859_v40 }
 0x218   : > { %1876 = vst [vmem:[%s2601_s7 + $0x50] sm:$0xff] %v1860_v24 }
 0x219   : > { %1877 = vst [vmem:[%s2601_s7 + $0x58] sm:$0xff] %v1861_v23 }
 0x21a   : > { %1878 = vst [vmem:[%s2601_s7 + $0x60] sm:$0xff] %v1862_v48 }
 0x21b   : > { %1879 = vst [vmem:[%s2601_s7 + $0x68] sm:$0xff] %v1863_v63 }
 0x21c   : > { %1880 = vst [vmem:[%s2601_s7 + $0x70] sm:$0xff] %v1864_v43 }
 0x21d   : > { %1881 = vst [vmem:[%s2601_s7 + $0x78] sm:$0xff] %v1865_v7 }
 0x21e PF: > { %s2075_s21 = sshll.u32 %s2423_s6, 7  ;;  %s3377_s23 = sld [smem:[#allocation16_spill]] }
 0x21f   : > { %s1898_s17 = sshll.u32 %s2601_s7, 4  ;;  %s1883_s15 = scalar_lea.sflag [#allocation6], %s325_s19  ;;  %s1899_s17 = int_to_ptr.vmem [resolvable:$true] %s1898_s17 }
 0x224   : > { %s1896_s20 = scalar_lea.hbm %s3377_s23, %s2075_s21  ;;  %s2333_s6 = scalar_lea.hbm %s3377_s23, 256 }
 0x225   : > { %s1900_s14 = sshll.u32 %s1896_s20, 4  ;;  %s1901_s14 = int_to_ptr.hbm [resolvable:$true] %s1900_s14 }
 0x226   : > { %s2327_s18 = sshra.s32 %s1901_s14, 4  ;;  %s2328_s18 = int_to_ptr.hbm [resolvable:$true] %s2327_s18 }
 0x227   : > { %s2329_s22 = scalar_lea.hbm %s2328_s18, 128  ;;  %p2334_p13 = scmp.lt.s32.totalorder %s2328_s18, %s3377_s23 }
 0x228   : > { %p2330_p9 = scmp.ne.s32.totalorder %s2328_s18, %s2329_s22  ;;  %p2335_p0 = scmp.lt.s32.totalorder %s2333_s6, %s2329_s22 }
 0x22a   : > { %p2331_p10 = pnand %p2330_p9, %p2564_p12  ;;  %p2336_p1 = por %p2335_p0, %p2334_p13 }
 0x22c   : > { %p2332_p11 = pneg %p2331_p10 }
 0x22e   : > { %p2337_p4 = pnand %p2336_p1, %p2332_p11 }
 0x230   : > { %2340 = shalt.err (!%p2337_p4)
}
 0x231   : > { %2078 = dma.vmem_to_hbm [thread:$0]  (%p2564_p12), %s1899_s17, 2048, %s1901_s14, %s1883_s15  }
 0x232 PF: > { %p2089_p5 = scmp.ge.s32.totalorder %s2435_s12, 2  ;;  %s1912_s19 = sand.u32 1, %s2395_s26  }
 0x233   : > { %s1913_s7 = scalar_lea.sflag [#allocation6], %s1912_s19 }
 0x234   : > { %p2085_p6 = pnand %p2089_p5, %p2577_p2 }
 0x236   : > { %p2086_p8 = pneg %p2085_p6 }
 0x238   : > { %2390 = dma.done.wait (%p2086_p8), %s1913_s7, 2048  }
 0x239   : > { %2392 = vsyncadd (%p2086_p8), %s1913_s7, 4294965248  ;;  %s25_s12 = sadd.s32 1, %s2435_s12   ;;  %s3378_s21 = sld [smem:[#allocation10_spill]] }
 0x23a   : > { %p22_p3 = scmp.ge.s32.totalorder %s25_s12, 6   ;;  %s3379_s28 = sld [smem:[#allocation14_spill]] }
 0x23b   : > { %s3380_s9 = sld [smem:[#allocation15_spill]]  ;;  %s3383_s26 = smov %s2399_s27 }
 0x23c   : > { %s3381_s13 = sld [smem:[#allocation11_spill]]  ;;  %s3385_s29 = smov %s2411_s30 }
 0x23d   : > { %s3382_s20 = sld [smem:[#allocation12_spill]]  ;;  %s3386_s30 = smov %s2415_s8 }
 0x23e   : > { %s3389_s6 = smov %s2431_s11 }
 0x23f   : > { %s3384_s27 = smov %s3378_s21  ;;  %24 = sbr.rel (!%p22_p3) target bundleno = 12 (0xc), region = 101 }
 0x241   : > { %s3387_s8 = smov %s3380_s9  ;;  %s3388_s9 = smov %s2427_s10 }
 0x242   : > { %s3390_s10 = smov %s3381_s13 }
 0x243   : > { %s3391_s11 = smov %s3382_s20 }
 0x244   :  { %1919 = vsyncpa [#allocation5], 1 }
 0x245   :  { %1921 = vsyncpa [#allocation5 + $0x1], 1 }
 0x246   :  { %1922 = vsyncpa [#allocation6], 1 }
 0x247   :  { %1924 = vsyncpa [#allocation6 + $0x1], 1 }

</bundles_post_ra>
